<compile_context>
chip_gen: v5e
topology: v5e:2x2
jax: 0.10.0
libtpu: 0.0.40
codegen_flags: <defaults>
</compile_context>

<pallas_src>
import functools

import jax
import jax.numpy as jnp
from jax import lax
from jax.experimental import pallas as pl
from jax.experimental.pallas import tpu as pltpu

LANE = 128


def _round_up(x, m):
    return (x + m - 1) // m * m


def _pad2d(a, rows, cols):
    return jnp.pad(a, ((0, rows - a.shape[0]), (0, cols - a.shape[1])))


def _pad_row(v, cols):
    return jnp.pad(v, (0, cols - v.shape[0])).reshape(1, cols)


# ----------------------------------------------------------------------------
# Kernel 1: fused SwiGLU   out = (x@Wg+bg) * sigmoid(beta*(x@Wg+bg)) * (x@W+b)
# ----------------------------------------------------------------------------
def _swiglu_kernel(beta_ref, x_ref, wcat_ref, bcat_ref, o_ref, *, hp):
    x = x_ref[...]                                          # (tm, hp) bf16
    # single fused matmul against [Wg | W]  -> lane-dense (tm, 2*hp) output
    y = jnp.dot(x, wcat_ref[...], preferred_element_type=jnp.float32)
    y = y + bcat_ref[...]                                   # f32 bias broadcast
    gate = y[:, :hp]
    lin = y[:, hp:]
    beta = beta_ref[0]                                      # scalar from SMEM
    swish = gate * jax.nn.sigmoid(beta * gate)              # f32 (EUP exp path)
    o_ref[...] = (swish * lin).astype(o_ref.dtype)


def swiglu_pallas(x, wg_t, bg, w_t, b, beta, *, tm=256,
                  matmul_dtype=jnp.bfloat16,
                  vmem_limit_bytes=48 * 1024 * 1024):
    """x: (M, H); wg_t/w_t: (H, H) laid out (in, out); bg/b: (H,); beta: (1,)."""
    M, H = x.shape
    Hp = _round_up(H, LANE)
    Mp = _round_up(M, tm)

    x_p = _pad2d(x, Mp, Hp).astype(matmul_dtype)
    wcat = jnp.concatenate(
        [_pad2d(wg_t, Hp, Hp), _pad2d(w_t, Hp, Hp)], axis=1).astype(matmul_dtype)
    bcat = jnp.concatenate(
        [_pad_row(bg, Hp), _pad_row(b, Hp)], axis=1).astype(jnp.float32)

    grid_spec = pltpu.PrefetchScalarGridSpec(
        num_scalar_prefetch=0,
        grid=(Mp // tm,),
        in_specs=[
            pl.BlockSpec(memory_space=pltpu.SMEM),              # beta (1,)
            pl.BlockSpec((tm, Hp), lambda i: (i, 0)),           # x tile
            pl.BlockSpec((Hp, 2 * Hp), lambda i: (0, 0)),       # [Wg | W] resident
            pl.BlockSpec((1, 2 * Hp), lambda i: (0, 0)),        # [bg | b]
        ],
        out_specs=pl.BlockSpec((tm, Hp), lambda i: (i, 0)),
    )

    out = pl.pallas_call(
        functools.partial(_swiglu_kernel, hp=Hp),
        out_shape=jax.ShapeDtypeStruct((Mp, Hp), jnp.float32),
        grid_spec=grid_spec,
        compiler_params=pltpu.CompilerParams(
            dimension_semantics=("parallel",),
            vmem_limit_bytes=vmem_limit_bytes),
    )(beta.astype(jnp.float32), x_p, wcat, bcat)
    return out[:M, :H]


# ----------------------------------------------------------------------------
# Kernel 2: fused MultiHeadAttention (concat-of-head linears + output linear)
#           -> LayerNorm -> final vocab projection
# ----------------------------------------------------------------------------
def _attn_ln_fc_kernel(x_ref, wh_ref, bh_ref, wo_ref, bo_ref,
                       gamma_ref, betaln_ref, wfc_ref, bfc_ref, o_ref,
                       *, h_real, eps):
    x = x_ref[...]                                          # (tm, Hp) bf16
    # concatenated per-head projections (== one (H, H) linear)
    h = jnp.dot(x, wh_ref[...], preferred_element_type=jnp.float32) + bh_ref[...]
    # output linear of the multi-head block
    c = jnp.dot(h.astype(wo_ref.dtype), wo_ref[...],
                preferred_element_type=jnp.float32) + bo_ref[...]
    # LayerNorm over the real (unpadded) hidden columns; padded columns of c
    # are exact zeros, so plain sums divided by h_real are correct.
    inv_h = 1.0 / h_real
    mean = jnp.sum(c, axis=-1, keepdims=True) * inv_h
    ex2 = jnp.sum(c * c, axis=-1, keepdims=True) * inv_h
    var = jnp.maximum(ex2 - mean * mean, 0.0)
    nrm = (c - mean) * lax.rsqrt(var + eps)
    nrm = nrm * gamma_ref[...] + betaln_ref[...]            # padded gamma/beta = 0
    out = jnp.dot(nrm.astype(wfc_ref.dtype), wfc_ref[...],
                  preferred_element_type=jnp.float32) + bfc_ref[...]
    o_ref[...] = out.astype(o_ref.dtype)


def attn_ln_fc_pallas(x, wh_t, bh, wo_t, bo, gamma, beta_ln, wfc_t, bfc,
                      *, tm=256, matmul_dtype=jnp.bfloat16, eps=1e-5,
                      vmem_limit_bytes=48 * 1024 * 1024):
    """x: (M, H); wh_t/wo_t: (H, H); wfc_t: (H, V) all laid out (in, out)."""
    M, H = x.shape
    V = wfc_t.shape[1]
    Hp = _round_up(H, LANE)
    Vp = _round_up(V, LANE)
    Mp = _round_up(M, tm)

    x_p = _pad2d(x, Mp, Hp).astype(matmul_dtype)
    wh_p = _pad2d(wh_t, Hp, Hp).astype(matmul_dtype)
    wo_p = _pad2d(wo_t, Hp, Hp).astype(matmul_dtype)
    wfc_p = _pad2d(wfc_t, Hp, Vp).astype(matmul_dtype)
    bh_p = _pad_row(bh, Hp).astype(jnp.float32)
    bo_p = _pad_row(bo, Hp).astype(jnp.float32)
    gamma_p = _pad_row(gamma, Hp).astype(jnp.float32)
    betaln_p = _pad_row(beta_ln, Hp).astype(jnp.float32)
    bfc_p = _pad_row(bfc, Vp).astype(jnp.float32)

    grid_spec = pltpu.PrefetchScalarGridSpec(
        num_scalar_prefetch=0,
        grid=(Mp // tm,),
        in_specs=[
            pl.BlockSpec((tm, Hp), lambda i: (i, 0)),           # x tile
            pl.BlockSpec((Hp, Hp), lambda i: (0, 0)),           # W_heads (resident)
            pl.BlockSpec((1, Hp), lambda i: (0, 0)),            # b_heads
            pl.BlockSpec((Hp, Hp), lambda i: (0, 0)),           # W_out (resident)
            pl.BlockSpec((1, Hp), lambda i: (0, 0)),            # b_out
            pl.BlockSpec((1, Hp), lambda i: (0, 0)),            # ln gamma
            pl.BlockSpec((1, Hp), lambda i: (0, 0)),            # ln beta
            pl.BlockSpec((Hp, Vp), lambda i: (0, 0)),           # W_fc (resident)
            pl.BlockSpec((1, Vp), lambda i: (0, 0)),            # b_fc
        ],
        out_specs=pl.BlockSpec((tm, Vp), lambda i: (i, 0)),
    )

    out = pl.pallas_call(
        functools.partial(_attn_ln_fc_kernel, h_real=H, eps=eps),
        out_shape=jax.ShapeDtypeStruct((Mp, Vp), jnp.float32),
        grid_spec=grid_spec,
        compiler_params=pltpu.CompilerParams(
            dimension_semantics=("parallel",),
            vmem_limit_bytes=vmem_limit_bytes),
    )(x_p, wh_p, bh_p, wo_p, bo_p, gamma_p, betaln_p, wfc_p, bfc_p)
    return out[:M, :V]


# ----------------------------------------------------------------------------
# Plain-JAX pieces: embedding gather + LSTM recurrence
# ----------------------------------------------------------------------------
def lstm_forward(x, lstm_params):
    # TODO(synk): LSTM recurrence left to XLA (lax.scan); the sequential time
    # dependence at this hidden size has no profitable Pallas formulation.
    out = x
    for layer in lstm_params:
        w_ih, w_hh = layer["w_ih"], layer["w_hh"]
        b_ih, b_hh = layer["b_ih"], layer["b_hh"]
        B = out.shape[0]
        H = w_hh.shape[1]

        def step(carry, x_t, w_ih=w_ih, w_hh=w_hh, b_ih=b_ih, b_hh=b_hh):
            h, c = carry
            gates = x_t @ w_ih.T + b_ih + h @ w_hh.T + b_hh
            i, f, g, o = jnp.split(gates, 4, axis=-1)        # PyTorch gate order
            i = jax.nn.sigmoid(i)
            f = jax.nn.sigmoid(f)
            g = jnp.tanh(g)
            o = jax.nn.sigmoid(o)
            c = f * c + i * g
            h = o * jnp.tanh(c)
            return (h, c), h

        h0 = jnp.zeros((B, H), jnp.float32)
        c0 = jnp.zeros((B, H), jnp.float32)
        xs = jnp.swapaxes(out, 0, 1)                         # (S, B, in)
        _, hs = lax.scan(step, (h0, c0), xs)
        out = jnp.swapaxes(hs, 0, 1)                         # (B, S, H)
        # inter-layer dropout is training-only; this is the inference path.
    return out


def enhanced_rnn_forward(tokens, params):
    emb = jnp.take(params["embedding"], tokens, axis=0)      # (B, S, E)
    rnn_out = lstm_forward(emb, params["lstm"])              # (B, S, H)
    B, S, H = rnn_out.shape
    x2d = rnn_out.reshape(B * S, H)

    sg = params["swiglu"]
    sw = swiglu_pallas(x2d, sg["wg"].T, sg["bg"], sg["w"].T, sg["b"], sg["beta"])

    mha, ln, fc = params["mha"], params["ln"], params["fc"]
    out2d = attn_ln_fc_pallas(
        sw,
        mha["w_heads"].T, mha["b_heads"],
        mha["w_out"].T, mha["b_out"],
        ln["gamma"], ln["beta"],
        fc["w"].T, fc["b"])
    V = fc["w"].shape[0]
    return out2d.reshape(B, S, V)


# ----------------------------------------------------------------------------
# Reference (same bf16-matmul semantics, pure jnp) for correctness checking
# ----------------------------------------------------------------------------
def _dot_ref(a, w, dtype):
    return jnp.dot(a.astype(dtype), w.astype(dtype),
                   preferred_element_type=jnp.float32)


def enhanced_rnn_reference(tokens, params, matmul_dtype=jnp.bfloat16, eps=1e-5):
    emb = jnp.take(params["embedding"], tokens, axis=0)
    rnn_out = lstm_forward(emb, params["lstm"])
    B, S, H = rnn_out.shape
    x = rnn_out.reshape(B * S, H)

    sg = params["swiglu"]
    gate = _dot_ref(x, sg["wg"].T, matmul_dtype) + sg["bg"]
    lin = _dot_ref(x, sg["w"].T, matmul_dtype) + sg["b"]
    sw = gate * jax.nn.sigmoid(sg["beta"][0] * gate) * lin

    mha, ln, fc = params["mha"], params["ln"], params["fc"]
    h = _dot_ref(sw, mha["w_heads"].T, matmul_dtype) + mha["b_heads"]
    c = _dot_ref(h, mha["w_out"].T, matmul_dtype) + mha["b_out"]
    mean = jnp.mean(c, axis=-1, keepdims=True)
    var = jnp.maximum(jnp.mean(c * c, axis=-1, keepdims=True) - mean * mean, 0.0)
    nrm = (c - mean) * lax.rsqrt(var + eps) * ln["gamma"] + ln["beta"]
    out = _dot_ref(nrm, fc["w"].T, matmul_dtype) + fc["b"]
    return out.reshape(B, S, fc["w"].shape[0])


# ----------------------------------------------------------------------------
# Deterministic parameter construction (PyTorch layouts: Linear weight = (out, in))
# ----------------------------------------------------------------------------
def init_params(key, vocab_size, embed_dim, hidden_dim, num_layers):
    ks = iter(jax.random.split(key, 4 * num_layers + 16))

    def nrm(shape, scale=0.1):
        return jax.random.normal(next(ks), shape, dtype=jnp.float32) * scale

    params = {}
    params["embedding"] = nrm((vocab_size, embed_dim), 1.0)   # "weights_matrix"
    lstm = []
    in_dim = embed_dim
    for _ in range(num_layers):
        lstm.append(dict(
            w_ih=nrm((4 * hidden_dim, in_dim)),
            w_hh=nrm((4 * hidden_dim, hidden_dim)),
            b_ih=nrm((4 * hidden_dim,)),
            b_hh=nrm((4 * hidden_dim,)),
        ))
        in_dim = hidden_dim
    params["lstm"] = lstm
    params["swiglu"] = dict(
        wg=nrm((hidden_dim, hidden_dim)), bg=nrm((hidden_dim,)),
        w=nrm((hidden_dim, hidden_dim)), b=nrm((hidden_dim,)),
        beta=jnp.ones((1,), jnp.float32),
    )
    # MultiHeadAttention: num_heads Linears (head_dim, hidden) concatenated
    # along the output dim == one (hidden, hidden) weight; then output linear.
    params["mha"] = dict(
        w_heads=nrm((hidden_dim, hidden_dim)), b_heads=nrm((hidden_dim,)),
        w_out=nrm((hidden_dim, hidden_dim)), b_out=nrm((hidden_dim,)),
    )
    params["ln"] = dict(gamma=jnp.ones((hidden_dim,), jnp.float32),
                        beta=jnp.zeros((hidden_dim,), jnp.float32))
    params["fc"] = dict(w=nrm((vocab_size, hidden_dim)), b=nrm((vocab_size,)))
    return params


if __name__ == "__main__":
    vocab_size = 50
    embed_dim = 16
    hidden_dim = 32
    num_layers = 1
    num_heads = 4          # head_dim = 8; heads are folded into w_heads above
    batch, seq = 2, 8

    key = jax.random.PRNGKey(0)
    k_params, k_tokens = jax.random.split(key)
    params = init_params(k_params, vocab_size, embed_dim, hidden_dim, num_layers)
    tokens = jax.random.randint(k_tokens, (batch, seq), 0, vocab_size,
                                dtype=jnp.int32)

    out = enhanced_rnn_forward(tokens, params)
    out = jax.block_until_ready(out)
    assert out.shape == (batch, seq, vocab_size)

    ref = enhanced_rnn_reference(tokens, params)
    assert jnp.allclose(out, ref, atol=2e-3, rtol=2e-2), (
        "mismatch vs reference, max abs diff = "
        + str(float(jnp.max(jnp.abs(out - ref)))))

    print("KERNEL_OK")
</pallas_src>

<mosaic_0001>
module attributes {stable_mosaic.version = 11 : i64} {
  func.func @_swiglu_kernel(%arg0: i32, %arg1: memref<1xf32, #tpu.memory_space<smem>>, %arg2: memref<256x128xbf16, #tpu.memory_space<vmem>>, %arg3: memref<128x256xbf16, #tpu.memory_space<vmem>>, %arg4: memref<1x256xf32, #tpu.memory_space<vmem>>, %arg5: memref<256x128xf32, #tpu.memory_space<vmem>>) attributes {dimension_semantics = [#tpu.dimension_semantics<parallel>], iteration_bounds = array<i64: 1>, scalar_prefetch = 0 : i64, scratch_operands = 0 : i64, tpu.core_type = #tpu.core_type<tc>, window_params = [{transform_indices = @transform_0, window_bounds = array<i64: 1>}, {transform_indices = @transform_1, window_bounds = array<i64: 256, 128>}, {pipeline_mode = #tpu.pipeline_mode<synchronous>, transform_indices = @transform_2, window_bounds = array<i64: 128, 256>}, {pipeline_mode = #tpu.pipeline_mode<synchronous>, transform_indices = @transform_3, window_bounds = array<i64: 1, 256>}, {transform_indices = @transform_4, window_bounds = array<i64: 256, 128>}]} {
    %c0 = arith.constant 0 : index
    %c0_0 = arith.constant 0 : index
    %0 = vector.load %arg2[%c0, %c0_0] : memref<256x128xbf16, #tpu.memory_space<vmem>>, vector<256x128xbf16>
    %c0_1 = arith.constant 0 : index
    %c0_2 = arith.constant 0 : index
    %1 = vector.load %arg3[%c0_1, %c0_2] : memref<128x256xbf16, #tpu.memory_space<vmem>>, vector<128x256xbf16>
    %cst = arith.constant dense<0.000000e+00> : vector<256x256xf32>
    %2 = tpu.matmul %0, %1, %cst {dimension_numbers = #tpu.dot_dimension_numbers<[1], [0], [0], [1], [0, 0, 1, 1], [], []>} : vector<256x128xbf16>, vector<128x256xbf16>, vector<256x256xf32> -> vector<256x256xf32>
    %c0_3 = arith.constant 0 : index
    %c0_4 = arith.constant 0 : index
    %3 = vector.load %arg4[%c0_3, %c0_4] : memref<1x256xf32, #tpu.memory_space<vmem>>, vector<1x256xf32>
    %4 = vector.broadcast %3 : vector<1x256xf32> to vector<256x256xf32>
    %5 = arith.addf %2, %4 : vector<256x256xf32>
    %6 = vector.extract_strided_slice %5 {offsets = [0, 0], sizes = [256, 128], strides = [1, 1]} : vector<256x256xf32> to vector<256x128xf32>
    %7 = vector.extract_strided_slice %5 {offsets = [0, 128], sizes = [256, 128], strides = [1, 1]} : vector<256x256xf32> to vector<256x128xf32>
    %c0_5 = arith.constant 0 : index
    %8 = memref.load %arg1[%c0_5] : memref<1xf32, #tpu.memory_space<smem>>
    %9 = vector.broadcast %8 : f32 to vector<256x128xf32>
    %10 = arith.mulf %9, %6 : vector<256x128xf32>
    %11 = arith.negf %10 : vector<256x128xf32>
    %12 = math.exp %11 : vector<256x128xf32>
    %cst_6 = arith.constant 1.000000e+00 : f32
    %13 = vector.broadcast %cst_6 : f32 to vector<256x128xf32>
    %14 = arith.addf %13, %12 : vector<256x128xf32>
    %15 = arith.divf %13, %14 : vector<256x128xf32>
    %16 = arith.mulf %6, %15 : vector<256x128xf32>
    %17 = arith.mulf %16, %7 : vector<256x128xf32>
    %c0_7 = arith.constant 0 : index
    %c0_8 = arith.constant 0 : index
    %18 = vector.load %arg5[%c0_7, %c0_8] : memref<256x128xf32, #tpu.memory_space<vmem>>, vector<256x128xf32>
    tpu.vector_store %arg5[%c0_7, %c0_8], %17 {strides = array<i32>} : memref<256x128xf32, #tpu.memory_space<vmem>>, vector<256x128xf32>,
    return
  }
  func.func @transform_0(%arg0: i32) -> i32 {
    %c0_i32 = arith.constant 0 : i32
    %c0_i32_0 = arith.constant 0 : i32
    return %c0_i32 : i32
  }
  func.func @transform_1(%arg0: i32) -> (i32, i32) {
    %c0_i32 = arith.constant 0 : i32
    %c0_i32_0 = arith.constant 0 : i32
    return %arg0, %c0_i32 : i32, i32
  }
  func.func @transform_2(%arg0: i32) -> (i32, i32) {
    %c0_i32 = arith.constant 0 : i32
    %c0_i32_0 = arith.constant 0 : i32
    %c0_i32_1 = arith.constant 0 : i32
    return %c0_i32, %c0_i32_0 : i32, i32
  }
  func.func @transform_3(%arg0: i32) -> (i32, i32) {
    %c0_i32 = arith.constant 0 : i32
    %c0_i32_0 = arith.constant 0 : i32
    %c0_i32_1 = arith.constant 0 : i32
    return %c0_i32, %c0_i32_0 : i32, i32
  }
  func.func @transform_4(%arg0: i32) -> (i32, i32) {
    %c0_i32 = arith.constant 0 : i32
    %c0_i32_0 = arith.constant 0 : i32
    return %arg0, %c0_i32 : i32, i32
  }
}

</mosaic_0001>

<bundles_post_ra>
// kernel: tpu_custom_call.1
= control target key start
LH: loop header
LB: loop body
LE: loop exit
PB: predicated region body
PF: predicated region fallthrough
CT: control target
= control target key end

     0   :  { %10 = vsyncpa [#allocation4], 0  ;;  %s2388_s0 = inlined_call_operand.<no memory space> [shape: f32[1], index: 0, kind: input, shape index: {}]   ;;  %s2389_s1 = inlined_call_operand.hbm [shape: bf16[256,128], index: 1, kind: input, shape index: {}]   ;;  %s2390_s2 = inlined_call_operand.hbm [shape: bf16[128,256], index: 2, kind: input, shape index: {}]   ;;  %s2391_s3 = inlined_call_operand.vmem [shape: f32[1,256], index: 3, kind: input, shape index: {}]   ;;  %s2392_s4 = inlined_call_operand.hbm [shape: f32[256,128], index: 4, kind: output, shape index: {}]  }
   0x1   :  { %11 = vsyncpa [#allocation7], 0 }
   0x2   :  { %12 = vsyncpa [#allocation5], 0  ;;  %s19_s17 = sshll.u32 %s2389_s1, 4  ;;  %s1638_s18 = smov [#allocation3]   ;;  %s20_s17 = int_to_ptr.hbm [resolvable:$true] %s19_s17 }
   0x3   :  { %s21_s19 = sshll.u32 %s1638_s18, 4  ;;  %s32_s22 = sshll.u32 %s2390_s2, 4  ;;  %s22_s19 = int_to_ptr.vmem [resolvable:$true] %s21_s19  ;;  %s33_s22 = int_to_ptr.hbm [resolvable:$true] %s32_s22 }
   0x4   :  { %s1639_s23 = smov 64   ;;  %s1640_s24 = smov 4  }
   0x5   :  { %27 = dma.hbm_to_vmem [thread:$0]  %s20_s17, 2048, %s22_s19, [#allocation4], %s1639_s23, %s1639_s23, %s1640_s24  }
   0x6   :  { %s1641_s25 = smov [#allocation6]   ;;  %s1642_s27 = smov 128  }
   0x7   :  { %s34_s26 = sshll.u32 %s1641_s25, 4  ;;  %s1643_s28 = smov 8   ;;  %s35_s26 = int_to_ptr.vmem [resolvable:$true] %s34_s26 }
   0x8   :  { %40 = dma.hbm_to_vmem [thread:$0]  %s33_s22, 2048, %s35_s26, [#allocation7], %s1642_s27, %s1642_s27, %s1643_s28  }
   0x9   :  { %1632 = dma.done.wait [#allocation4], 2048  }
   0xa   :  { %1633 = vsyncadd [#allocation4], 4294965248 }
   0xb   :  { %1634 = dma.done.wait [#allocation7], 2048  }
   0xc   :  { %1635 = vsyncadd [#allocation7], 4294965248  ;;  %v1339_v0 = vld [vmem:[#allocation6 + $0x70] sm:$0xf]  ;;  %v1408_v1 = vld [vmem:[#allocation6 + $0x74] sm:$0xf0] }
   0xd   :  { %v1331_v2 = vld [vmem:[#allocation6 + $0x60] sm:$0xf]  ;;  %v1340_v3 = vor.u32 %v1408_v1, %v1339_v0  ;;  %v1406_v4 = vld [vmem:[#allocation6 + $0x64] sm:$0xf0]  ;;  %v1323_v6 = vld [vmem:[#allocation6 + $0x50] sm:$0xf] }
   0xe   :  { %v1332_v5 = vor.u32 %v1406_v4, %v1331_v2  ;;  %v1404_v7 = vld [vmem:[#allocation6 + $0x54] sm:$0xf0]  ;;  %v1407_v8 = vld [vmem:[#allocation6 + $0x74] sm:$0xf]  ;;  %v1341_v9 = vld [vmem:[#allocation6 + $0x78] sm:$0xf0] }
   0xf   :  { %281 = vmatpush.bf16.msra.mxu0 %v1340_v3  ;;  %1409 = vmatpush.bf16.msra.mxu2 %v1340_v3  ;;  %v1344_v10 = vor.u32 %v1407_v8, %v1341_v9  ;;  %v1405_v11 = vld [vmem:[#allocation6 + $0x64] sm:$0xf]  ;;  %v1333_v12 = vld [vmem:[#allocation6 + $0x68] sm:$0xf0]  ;;  %v1324_v13 = vor.u32 %v1404_v7, %v1323_v6  ;;  %v1315_v14 = vld [vmem:[#allocation6 + $0x40] sm:$0xf]  ;;  %v1687_v3 = vstv %s2388_s0 }
  0x10   :  { %v1402_v15 = vld [vmem:[#allocation6 + $0x44] sm:$0xf0]  ;;  %v1336_v16 = vor.u32 %v1405_v11, %v1333_v12  ;;  %v1403_v17 = vld [vmem:[#allocation6 + $0x54] sm:$0xf]  ;;  %v1325_v18 = vld [vmem:[#allocation6 + $0x58] sm:$0xf0] }
  0x11   :  { %1417 = vmatpush.bf16.msra.mxu3 %v1344_v10  ;;  %370 = vmatpush.bf16.msra.mxu1 %v1344_v10  ;;  %v1316_v19 = vor.u32 %v1402_v15, %v1315_v14  ;;  %v1307_v20 = vld [vmem:[#allocation6 + $0x30] sm:$0xf]  ;;  %v1400_v21 = vld [vmem:[#allocation6 + $0x34] sm:$0xf0]  ;;  %v1328_v22 = vor.u32 %v1403_v17, %v1325_v18  ;;  %v1401_v23 = vld [vmem:[#allocation6 + $0x44] sm:$0xf] }
  0x12   :  { %v1317_v24 = vld [vmem:[#allocation6 + $0x48] sm:$0xf0]  ;;  %v1308_v25 = vor.u32 %v1400_v21, %v1307_v20  ;;  %v1299_v26 = vld [vmem:[#allocation6 + $0x20] sm:$0xf]  ;;  %v1398_v27 = vld [vmem:[#allocation6 + $0x24] sm:$0xf0] }
  0x13   :  { %282 = vmatpush.bf16.msra.mxu0 %v1332_v5  ;;  %1410 = vmatpush.bf16.msra.mxu2 %v1332_v5  ;;  %v1320_v28 = vor.u32 %v1401_v23, %v1317_v24  ;;  %v1399_v29 = vld [vmem:[#allocation6 + $0x34] sm:$0xf]  ;;  %v1309_v30 = vld [vmem:[#allocation6 + $0x38] sm:$0xf0]  ;;  %v1300_v31 = vor.u32 %v1398_v27, %v1299_v26  ;;  %v1291_v32 = vld [vmem:[#allocation6 + $0x10] sm:$0xf] }
  0x14   :  { %v1396_v33 = vld [vmem:[#allocation6 + $0x14] sm:$0xf0]  ;;  %v1312_v34 = vor.u32 %v1399_v29, %v1309_v30  ;;  %v1397_v35 = vld [vmem:[#allocation6 + $0x24] sm:$0xf]  ;;  %v1301_v36 = vld [vmem:[#allocation6 + $0x28] sm:$0xf0] }
  0x15   :  { %1418 = vmatpush.bf16.msra.mxu3 %v1336_v16  ;;  %371 = vmatpush.bf16.msra.mxu1 %v1336_v16  ;;  %v1292_v37 = vor.u32 %v1396_v33, %v1291_v32  ;;  %v1283_v38 = vld [vmem:[#allocation6] sm:$0xf]  ;;  %v1394_v39 = vld [vmem:[#allocation6 + $0x4] sm:$0xf0]  ;;  %v1304_v40 = vor.u32 %v1397_v35, %v1301_v36  ;;  %v1395_v41 = vld [vmem:[#allocation6 + $0x14] sm:$0xf] }
  0x16   :  { %v1293_v42 = vld [vmem:[#allocation6 + $0x18] sm:$0xf0]  ;;  %v1284_v43 = vor.u32 %v1394_v39, %v1283_v38  ;;  %v1393_v45 = vld [vmem:[#allocation6 + $0x4] sm:$0xf]  ;;  %v1285_v46 = vld [vmem:[#allocation6 + $0x8] sm:$0xf0] }
  0x17   :  { %283 = vmatpush.bf16.msra.mxu0 %v1324_v13  ;;  %1411 = vmatpush.bf16.msra.mxu2 %v1324_v13  ;;  %v1296_v44 = vor.u32 %v1395_v41, %v1293_v42  ;;  %v1377_v47 = vld [vmem:[#allocation3] sm:$0xff]  ;;  %v1288_v49 = vor.u32 %v1393_v45, %v1285_v46  ;;  %v1378_v50 = vld [vmem:[#allocation3 + $0x8] sm:$0xff]  ;;  %v1379_v52 = vld [vmem:[#allocation3 + $0x10] sm:$0xff]  ;;  %s1644_s0 = smov [#allocation8]   ;;  %s1203_s7 = sshll.u32 %s2392_s4, 4  ;;  %s1204_s7 = int_to_ptr.hbm [resolvable:$true] %s1203_s7 }
  0x18   :  { %v1385_v48 = vld [vmem:[#allocation3 + $0x40] sm:$0xff]  ;;  %v1386_v51 = vld [vmem:[#allocation3 + $0x48] sm:$0xff]  ;;  %v1387_v53 = vld [vmem:[#allocation3 + $0x50] sm:$0xff] }
  0x19   :  { %1419 = vmatpush.bf16.msra.mxu3 %v1328_v22  ;;  %372 = vmatpush.bf16.msra.mxu1 %v1328_v22  ;;  %v1380_v54 = vld [vmem:[#allocation3 + $0x18] sm:$0xff]  ;;  %v1381_v56 = vld [vmem:[#allocation3 + $0x20] sm:$0xff]  ;;  %v1382_v58 = vld [vmem:[#allocation3 + $0x28] sm:$0xff] }
  0x1a   :  { %v1388_v55 = vld [vmem:[#allocation3 + $0x58] sm:$0xff]  ;;  %v1389_v57 = vld [vmem:[#allocation3 + $0x60] sm:$0xff]  ;;  %v1390_v59 = vld [vmem:[#allocation3 + $0x68] sm:$0xff] }
  0x1b   :  { %284 = vmatpush.bf16.msra.mxu0 %v1316_v19  ;;  %1412 = vmatpush.bf16.msra.mxu2 %v1316_v19  ;;  %v1383_v60 = vld [vmem:[#allocation3 + $0x30] sm:$0xff]  ;;  %v1384_v62 = vld [vmem:[#allocation3 + $0x38] sm:$0xff]  ;;  %v99_v0 = vld [vmem:[%s2391_s3] sm:$0x3]  ;;  %s1201_s3 = sshll.u32 %s1644_s0, 4  ;;  %s1202_s3 = int_to_ptr.vmem [resolvable:$true] %s1201_s3 }
  0x1c   :  { %v1391_v61 = vld [vmem:[#allocation3 + $0x70] sm:$0xff]  ;;  %v1392_v63 = vld [vmem:[#allocation3 + $0x78] sm:$0xff]  ;;  %v1682_v1 = vperm.slane %v99_v0, 0 }
  0x1d   :  { %1420 = vmatpush.bf16.msra.mxu3 %v1320_v28  ;;  %373 = vmatpush.bf16.msra.mxu1 %v1320_v28  ;;  %v1716_v28 = vperm.slane %v99_v0, 1 }
  0x1f   :  { %285 = vmatpush.bf16.msra.mxu0 %v1308_v25  ;;  %1413 = vmatpush.bf16.msra.mxu2 %v1308_v25 }
  0x21   :  { %1421 = vmatpush.bf16.msra.mxu3 %v1312_v34  ;;  %374 = vmatpush.bf16.msra.mxu1 %v1312_v34 }
  0x23   :  { %286 = vmatpush.bf16.msra.mxu0 %v1300_v31  ;;  %1414 = vmatpush.bf16.msra.mxu2 %v1300_v31 }
  0x25   :  { %1422 = vmatpush.bf16.msra.mxu3 %v1304_v40  ;;  %375 = vmatpush.bf16.msra.mxu1 %v1304_v40 }
  0x27   :  { %287 = vmatpush.bf16.msra.mxu0 %v1292_v37  ;;  %1415 = vmatpush.bf16.msra.mxu2 %v1292_v37 }
  0x29   :  { %1423 = vmatpush.bf16.msra.mxu3 %v1296_v44  ;;  %376 = vmatpush.bf16.msra.mxu1 %v1296_v44 }
  0x2b   :  { %288 = vmatpush.bf16.msra.mxu0 %v1284_v43  ;;  %1416 = vmatpush.bf16.msra.mxu2 %v1284_v43 }
  0x2d   :  { %1424 = vmatpush.bf16.msra.mxu3 %v1288_v49  ;;  %377 = vmatpush.bf16.msra.mxu1 %v1288_v49 }
  0x2e   :  { %289 = vmatmul.bf16.vlgmr.msra.gmra.mxu0 %v1377_v47  ;;  %329 = vmatmul.bf16.vlgmr.msra.gmra.mxu2 %v1385_v48 }
  0x30   :  { %418 = vmatmul.bf16.vlgmr.msra.gmra.mxu3 %v1385_v48  ;;  %378 = vmatmul.bf16.vlgmr.msra.gmra.mxu1 %v1377_v47 }
  0x3e   :  { %294 = vmatmul.bf16.gmra.mxu0 %v1378_v50  ;;  %334 = vmatmul.bf16.gmra.mxu2 %v1386_v51 }
  0x40   :  { %423 = vmatmul.bf16.gmra.mxu3 %v1386_v51  ;;  %383 = vmatmul.bf16.gmra.mxu1 %v1378_v50 }
  0x4e   :  { %299 = vmatmul.bf16.gmra.mxu0 %v1379_v52  ;;  %339 = vmatmul.bf16.gmra.mxu2 %v1387_v53 }
  0x50   :  { %428 = vmatmul.bf16.gmra.mxu3 %v1387_v53  ;;  %388 = vmatmul.bf16.gmra.mxu1 %v1379_v52 }
  0x5e   :  { %304 = vmatmul.bf16.gmra.mxu0 %v1380_v54  ;;  %344 = vmatmul.bf16.gmra.mxu2 %v1388_v55 }
  0x60   :  { %433 = vmatmul.bf16.gmra.mxu3 %v1388_v55  ;;  %393 = vmatmul.bf16.gmra.mxu1 %v1380_v54 }
  0x6e   :  { %309 = vmatmul.bf16.gmra.mxu0 %v1381_v56  ;;  %349 = vmatmul.bf16.gmra.mxu2 %v1389_v57 }
  0x70   :  { %438 = vmatmul.bf16.gmra.mxu3 %v1389_v57  ;;  %398 = vmatmul.bf16.gmra.mxu1 %v1381_v56 }
  0x7e   :  { %314 = vmatmul.bf16.gmra.mxu0 %v1382_v58  ;;  %354 = vmatmul.bf16.gmra.mxu2 %v1390_v59 }
  0x80   :  { %443 = vmatmul.bf16.gmra.mxu3 %v1390_v59  ;;  %403 = vmatmul.bf16.gmra.mxu1 %v1382_v58 }
  0x8e   :  { %319 = vmatmul.bf16.gmra.mxu0 %v1383_v60  ;;  %359 = vmatmul.bf16.gmra.mxu2 %v1391_v61 }
  0x90   :  { %448 = vmatmul.bf16.gmra.mxu3 %v1391_v61  ;;  %408 = vmatmul.bf16.gmra.mxu1 %v1383_v60 }
  0x9e   :  { %324 = vmatmul.bf16.gmra.mxu0 %v1384_v62  ;;  %364 = vmatmul.bf16.gmra.mxu2 %v1392_v63 }
  0xa0   :  { %453 = vmatmul.bf16.gmra.mxu3 %v1392_v63  ;;  %413 = vmatmul.bf16.gmra.mxu1 %v1384_v62 }
  0xab   :  { %v290_v2 = vpop.f32.mrf.mxu0 }
  0xac   :  { %v1690_v4 = vadd.f32 %v290_v2, %v1682_v1 }
  0xad   :  { %v379_v16 = vpop.f32.mrf.mxu1 }
  0xae   :  { %v461_v5 = vmul.f32 %v1687_v3, %v1690_v4  ;;  %v380_v40 = vadd.f32 %v379_v16, %v1716_v28 }
  0xb0   :  { %v1345_v6 = vmul.f32 -1.442695, %v461_v5 }
  0xb1   :  { %v330_v7 = vpop.f32.mrf.mxu2 }
  0xb2   :  { %1432 = vpow2.f32 %v1345_v6  ;;  %v1695_v8 = vadd.f32 %v330_v7, %v1682_v1 }
  0xb3   :  { %v292_v9 = vpop.f32.mrf.mxu0  ;;  %v419_v20 = vpop.f32.mrf.mxu3 }
  0xb4   :  { %v477_v10 = vmul.f32 %v1687_v3, %v1695_v8  ;;  %v1700_v11 = vadd.f32 %v292_v9, %v1682_v1  ;;  %v1726_v41 = vadd.f32 %v419_v20, %v1716_v28 }
  0xb5   :  { %v381_v37 = vpop.f32.mrf.mxu1 }
  0xb6   :  { %v1361_v12 = vmul.f32 -1.442695, %v477_v10  ;;  %v462_v13 = vmul.f32 %v1687_v3, %v1700_v11  ;;  %v1737_v48 = vadd.f32 %v381_v37, %v1716_v28 }
  0xb8   :  { %v1433_v14 = vpop.eup %1432  ;;  %1434 = vpow2.f32 %v1361_v12  ;;  %v1346_v15 = vmul.f32 -1.442695, %v462_v13 }
  0xb9   :  { %v589_v17 = vadd.f32 1.0, %v1433_v14  ;;  %v332_v18 = vpop.f32.mrf.mxu2 }
  0xba   :  { %1436 = vpow2.f32 %v1346_v15  ;;  %v1705_v19 = vadd.f32 %v332_v18, %v1682_v1 }
  0xbb   :  { %1438 = vrcp.f32 %v589_v17  ;;  %v295_v21 = vpop.f32.mrf.mxu0  ;;  %v630_v32 = vand.u32 2147483647, %v589_v17  ;;  %v632_v35 = vand.u32 2147483648, %v589_v17  ;;  %v421_v45 = vpop.f32.mrf.mxu3  ;;  %vm626_vm0 = vweird.f32 %v589_v17 }
  0xbc   :  { %v478_v22 = vmul.f32 %v1687_v3, %v1705_v19  ;;  %v1710_v23 = vadd.f32 %v295_v21, %v1682_v1  ;;  %v1747_v56 = vadd.f32 %v421_v45, %v1716_v28 }
  0xbd   :  { %vm1739_vm2 = vcmp.eq.f32.partialorder %v630_v32, 8.507059e+37  ;;  %v633_v52 = vor.u32 1.1754944e-38, %v632_v35 }
  0xbe   :  { %v1435_v24 = vpop.eup %1434  ;;  %v1362_v25 = vmul.f32 -1.442695, %v478_v22  ;;  %v463_v26 = vmul.f32 %v1687_v3, %v1710_v23 }
  0xbf   :  { %v1714_v27 = vadd.f32 1.0, %v1435_v24 }
  0xc0   :  { %v1437_v29 = vpop.eup %1436  ;;  %1440 = vpow2.f32 %v1362_v25  ;;  %v1347_v30 = vmul.f32 -1.442695, %v463_v26 }
  0xc1   :  { %v1439_v31 = vpop.eup %1438  ;;  %1442 = vrcp.f32 %v1714_v27  ;;  %v335_v33 = vpop.f32.mrf.mxu2  ;;  %v1719_v36 = vadd.f32 1.0, %v1437_v29  ;;  %v870_v43 = vand.u32 2147483647, %v1714_v27  ;;  %v872_v44 = vand.u32 2147483648, %v1714_v27 }
  0xc2   :  { %v622_v34 = vmul.f32 %v1439_v31, %v589_v17  ;;  %1444 = vpow2.f32 %v1347_v30  ;;  %v1722_v38 = vadd.f32 %v335_v33, %v1682_v1  ;;  %vm627_vm1 = vweird.f32 %v1439_v31 }
  0xc3   :  { %v297_v39 = vpop.f32.mrf.mxu0  ;;  %1446 = vrcp.f32 %v1719_v36  ;;  %vm866_vm3 = vweird.f32 %v1714_v27  ;;  %vm1750_vm4 = vcmp.eq.f32.partialorder %v870_v43, 8.507059e+37  ;;  %v873_v61 = vor.u32 1.1754944e-38, %v872_v44  ;;  %vm628_vm5 = vmor %vm626_vm0, %vm627_vm1 }
  0xc4   :  { %v623_v42 = vsub.f32 1.0, %v622_v34  ;;  %v479_v46 = vmul.f32 %v1687_v3, %v1722_v38  ;;  %v1734_v47 = vadd.f32 %v297_v39, %v1682_v1  ;;  %v645_v62 = vand.u32 2147483647, %v1719_v36 }
  0xc5   :  { %v647_v63 = vand.u32 2147483648, %v1719_v36  ;;  %vm641_vm7 = vweird.f32 %v1719_v36 }
  0xc6   :  { %v1441_v49 = vpop.eup %1440  ;;  %v624_v50 = vmul.f32 %v1439_v31, %v623_v42  ;;  %v1363_v55 = vmul.f32 -1.442695, %v479_v46  ;;  %v464_v0 = vmul.f32 %v1687_v3, %v1734_v47  ;;  %vm1769_vm8 = vcmp.eq.f32.partialorder %v645_v62, 8.507059e+37 }
  0xc7   :  { %v1443_v53 = vpop.eup %1442  ;;  %v1744_v54 = vadd.f32 1.0, %v1441_v49  ;;  %v648_v20 = vor.u32 1.1754944e-38, %v647_v63 }
  0xc8   :  { %v1445_v57 = vpop.eup %1444  ;;  %v625_v58 = vadd.f32 %v1439_v31, %v624_v50  ;;  %v862_v59 = vmul.f32 %v1443_v53, %v1714_v27  ;;  %vm867_vm6 = vweird.f32 %v1443_v53  ;;  %v1348_v24 = vmul.f32 -1.442695, %v464_v0 }
  0xc9   :  { %1448 = vrcp.f32 %v1744_v54  ;;  %v337_v2 = vpop.f32.mrf.mxu2  ;;  %v1447_v5 = vpop.eup %1446  ;;  %v1760_v9 = vadd.f32 1.0, %v1445_v57  ;;  %v885_v16 = vand.u32 2147483647, %v1744_v54  ;;  %v887_v21 = vand.u32 2147483648, %v1744_v54  ;;  %vm868_vm9 = vmor %vm866_vm3, %vm867_vm6 }
  0xca   :  { %v629_v6 = vsel %vm628_vm5, %v1439_v31, %v625_v58  ;;  %v863_v7 = vsub.f32 1.0, %v862_v59  ;;  %1450 = vpow2.f32 %v1363_v55  ;;  %v637_v12 = vmul.f32 %v1447_v5, %v1719_v36 }
  0xcb   :  { %v634_v10 = vsel %vm1739_vm2, %v633_v52, %v629_v6  ;;  %v300_v13 = vpop.f32.mrf.mxu0  ;;  %1452 = vrcp.f32 %v1760_v9  ;;  %v1775_v25 = vadd.f32 %v337_v2, %v1682_v1  ;;  %vm642_vm10 = vweird.f32 %v1447_v5 }
  0xcc   :  { %v1101_v14 = vmul.f32 %v634_v10, %v1690_v4  ;;  %v864_v15 = vmul.f32 %v1443_v53, %v863_v7  ;;  %v638_v17 = vsub.f32 1.0, %v637_v12  ;;  %vm881_vm11 = vweird.f32 %v1744_v54  ;;  %vm643_vm13 = vmor %vm641_vm7, %vm642_vm10  ;;  %v384_v7 = vpop.f32.mrf.mxu1 }
  0xcd   :  { %v1782_v30 = vadd.f32 %v300_v13, %v1682_v1  ;;  %vm1785_vm12 = vcmp.eq.f32.partialorder %v885_v16, 8.507059e+37  ;;  %1454 = vpow2.f32 %v1348_v24  ;;  %v480_v39 = vmul.f32 %v1687_v3, %v1775_v25 }
  0xce   :  { %v865_v22 = vadd.f32 %v1443_v53, %v864_v15  ;;  %v1133_v26 = vmul.f32 %v1101_v14, %v380_v40  ;;  %v639_v29 = vmul.f32 %v1447_v5, %v638_v17  ;;  %v888_v45 = vor.u32 1.1754944e-38, %v887_v21 }
  0xcf   :  { %v1449_v4 = vpop.eup %1448  ;;  %v465_v46 = vmul.f32 %v1687_v3, %v1782_v30  ;;  %vm656_vm14 = vweird.f32 %v1760_v9  ;;  %v660_v55 = vand.u32 2147483647, %v1760_v9  ;;  %v1364_v57 = vmul.f32 -1.442695, %v480_v39 }
  0xd0   :  { %v1451_v31 = vpop.eup %1450  ;;  %v869_v32 = vsel %vm868_vm9, %v1443_v53, %v865_v22  ;;  %v877_v33 = vmul.f32 %v1449_v4, %v1744_v54  ;;  %1165 = vst [vmem:[#allocation8] sm:$0xff] %v1133_v26  ;;  %v640_v35 = vadd.f32 %v1447_v5, %v639_v29  ;;  %vm882_vm15 = vweird.f32 %v1449_v4 }
  0xd1   :  { %v874_v27 = vsel %vm1750_vm4, %v873_v61, %v869_v32  ;;  %v1791_v37 = vadd.f32 1.0, %v1451_v31  ;;  %v340_v40 = vpop.f32.mrf.mxu2  ;;  %v1453_v42 = vpop.eup %1452  ;;  %v662_v61 = vand.u32 2147483648, %v1760_v9  ;;  %v1349_v63 = vmul.f32 -1.442695, %v465_v46  ;;  %vm883_vm0 = vmor %vm881_vm11, %vm882_vm15 }
  0xd2   :  { %v1117_v43 = vmul.f32 %v874_v27, %v1695_v8  ;;  %v878_v44 = vsub.f32 1.0, %v877_v33  ;;  %v644_v49 = vsel %vm643_vm13, %v1447_v5, %v640_v35  ;;  %v652_v50 = vmul.f32 %v1453_v42, %v1760_v9 }
  0xd3   :  { %1456 = vrcp.f32 %v1791_v37  ;;  %v649_v51 = vsel %vm1769_vm8, %v648_v20, %v644_v49  ;;  %v1807_v36 = vadd.f32 %v340_v40, %v1682_v1  ;;  %v302_v58 = vpop.f32.mrf.mxu0  ;;  %v1455_v59 = vpop.eup %1454  ;;  %vm657_vm1 = vweird.f32 %v1453_v42 }
  0xd4   :  { %v879_v8 = vmul.f32 %v1449_v4, %v878_v44  ;;  %v1102_v52 = vmul.f32 %v649_v51, %v1700_v11  ;;  %v653_v53 = vsub.f32 1.0, %v652_v50  ;;  %v1149_v62 = vmul.f32 %v1117_v43, %v1726_v41  ;;  %vm658_vm2 = vmor %vm656_vm14, %vm657_vm1  ;;  %v424_v44 = vpop.f32.mrf.mxu3 }
  0xd5   :  { %v1815_v2 = vadd.f32 1.0, %v1455_v59  ;;  %1458 = vpow2.f32 %v1364_v57  ;;  %v481_v5 = vmul.f32 %v1687_v3, %v1807_v36  ;;  %v385_v13 = vadd.f32 %v384_v7, %v1716_v28 }
  0xd6   :  { %v880_v60 = vadd.f32 %v1449_v4, %v879_v8  ;;  %v654_v0 = vmul.f32 %v1453_v42, %v653_v53  ;;  %1181 = vst [vmem:[#allocation8 + $0x80] sm:$0xff] %v1149_v62  ;;  %1460 = vpow2.f32 %v1349_v63  ;;  %v1134_v6 = vmul.f32 %v1102_v52, %v1737_v48 }
  0xd7   :  { %1462 = vrcp.f32 %v1815_v2  ;;  %vm661_vm3 = vcmp.eq.f32.partialorder %v660_v55, 8.507059e+37  ;;  %v663_v15 = vor.u32 1.1754944e-38, %v662_v61  ;;  %v900_v17 = vand.u32 2147483647, %v1791_v37 }
  0xd8   :  { %v884_v11 = vsel %vm883_vm0, %v1449_v4, %v880_v60  ;;  %v655_v54 = vadd.f32 %v1453_v42, %v654_v0  ;;  %1166 = vst [vmem:[#allocation8 + $0x8] sm:$0xff] %v1134_v6  ;;  %v1365_v18 = vmul.f32 -1.442695, %v481_v5  ;;  %v1831_v20 = vadd.f32 %v302_v58, %v1682_v1 }
  0xd9   :  { %v1457_v10 = vpop.eup %1456  ;;  %v889_v41 = vsel %vm1785_vm12, %v888_v45, %v884_v11  ;;  %v342_v12 = vpop.f32.mrf.mxu2  ;;  %vm896_vm4 = vweird.f32 %v1791_v37  ;;  %vm1843_vm6 = vcmp.eq.f32.partialorder %v900_v17, 8.507059e+37  ;;  %vm671_vm8 = vweird.f32 %v1815_v2 }
  0xda   :  { %v1118_v14 = vmul.f32 %v889_v41, %v1705_v19  ;;  %v892_v48 = vmul.f32 %v1457_v10, %v1791_v37  ;;  %v659_v16 = vsel %vm658_vm2, %v1453_v42, %v655_v54  ;;  %v902_v19 = vand.u32 2147483648, %v1791_v37 }
  0xdb   :  { %v664_v21 = vsel %vm661_vm3, %v663_v15, %v659_v16  ;;  %v1459_v9 = vpop.eup %1458  ;;  %1464 = vpow2.f32 %v1365_v18  ;;  %v466_v4 = vmul.f32 %v1687_v3, %v1831_v20  ;;  %vm897_vm5 = vweird.f32 %v1457_v10  ;;  %v305_v35 = vpop.f32.mrf.mxu0 }
  0xdc   :  { %v893_v22 = vsub.f32 1.0, %v892_v48  ;;  %v1150_v24 = vmul.f32 %v1118_v14, %v1747_v56  ;;  %v1103_v26 = vmul.f32 %v664_v21, %v1710_v23  ;;  %v1461_v29 = vpop.eup %1460  ;;  %v1839_v32 = vadd.f32 1.0, %v1459_v9  ;;  %vm898_vm7 = vmor %vm896_vm4, %vm897_vm5  ;;  %v386_v15 = vpop.f32.mrf.mxu1 }
  0xdd   :  { %v1841_v33 = vpop.eup %1462  ;;  %v675_v23 = vand.u32 2147483647, %v1815_v2  ;;  %v1848_v56 = vadd.f32 1.0, %v1461_v29  ;;  %v903_v40 = vor.u32 1.1754944e-38, %v902_v19  ;;  %v1350_v42 = vmul.f32 -1.442695, %v466_v4  ;;  %v426_v4 = vpop.f32.mrf.mxu3 }
  0xde   :  { %v894_v31 = vmul.f32 %v1457_v10, %v893_v22  ;;  %1182 = vst [vmem:[#allocation8 + $0x88] sm:$0xff] %v1150_v24  ;;  %v1135_v27 = vmul.f32 %v1103_v26, %v385_v13  ;;  %v667_v37 = vmul.f32 %v1841_v33, %v1815_v2  ;;  %1466 = vrcp.f32 %v1839_v32 }
  0xdf   :  { %1468 = vrcp.f32 %v1848_v56  ;;  %v1856_v43 = vadd.f32 %v342_v12, %v1682_v1  ;;  %v677_v49 = vand.u32 2147483648, %v1815_v2  ;;  %v1860_v50 = vadd.f32 %v305_v35, %v1682_v1 }
  0xe0   :  { %v895_v39 = vadd.f32 %v1457_v10, %v894_v31  ;;  %1167 = vst [vmem:[#allocation8 + $0x10] sm:$0xff] %v1135_v27  ;;  %v668_v46 = vsub.f32 1.0, %v667_v37  ;;  %vm672_vm9 = vweird.f32 %v1841_v33  ;;  %vm1865_vm10 = vcmp.eq.f32.partialorder %v675_v23, 8.507059e+37 }
  0xe1   :  { %v1465_v51 = vpop.eup %1464  ;;  %v425_v53 = vadd.f32 %v424_v44, %v1716_v28  ;;  %v345_v55 = vpop.f32.mrf.mxu2  ;;  %v915_v58 = vand.u32 2147483647, %v1839_v32  ;;  %v917_v59 = vand.u32 2147483648, %v1839_v32  ;;  %v690_v61 = vand.u32 2147483647, %v1848_v56  ;;  %vm1892_vm12 = vmor %vm671_vm8, %vm672_vm9 }
  0xe2   :  { %v899_v45 = vsel %vm898_vm7, %v1457_v10, %v895_v39  ;;  %v669_v57 = vmul.f32 %v1841_v33, %v668_v46  ;;  %v1873_v60 = vadd.f32 1.0, %v1465_v51  ;;  %v692_v62 = vand.u32 2147483648, %v1848_v56 }
  0xe3   :  { %v904_v8 = vsel %vm1843_vm6, %v903_v40, %v899_v45  ;;  %1470 = vpow2.f32 %v1350_v42  ;;  %v482_v63 = vmul.f32 %v1687_v3, %v1856_v43  ;;  %v467_v6 = vmul.f32 %v1687_v3, %v1860_v50  ;;  %v307_v23 = vpop.f32.mrf.mxu0 }
  0xe4   :  { %v1467_v0 = vpop.eup %1466  ;;  %v1119_v11 = vmul.f32 %v904_v8, %v1722_v38  ;;  %v670_v5 = vadd.f32 %v1841_v33, %v669_v57  ;;  %1472 = vrcp.f32 %v1873_v60  ;;  %v678_v10 = vor.u32 1.1754944e-38, %v677_v49 }
  0xe5   :  { %v1884_v7 = vpop.eup %1468  ;;  %v907_v41 = vmul.f32 %v1467_v0, %v1839_v32  ;;  %vm911_vm11 = vweird.f32 %v1839_v32  ;;  %v1366_v54 = vmul.f32 -1.442695, %v482_v63  ;;  %vm1896_vm13 = vcmp.eq.f32.partialorder %v915_v58, 8.507059e+37 }
  0xe6   :  { %v918_v13 = vor.u32 1.1754944e-38, %v917_v59  ;;  %v682_v14 = vmul.f32 %v1884_v7, %v1848_v56  ;;  %vm686_vm14 = vweird.f32 %v1848_v56  ;;  %v674_v48 = vsel %vm1892_vm12, %v1841_v33, %v670_v5 }
  0xe7   :  { %v908_v2 = vsub.f32 1.0, %v907_v41  ;;  %v693_v16 = vor.u32 1.1754944e-38, %v692_v62  ;;  %1474 = vpow2.f32 %v1366_v54  ;;  %vm1906_vm15 = vcmp.eq.f32.partialorder %v690_v61, 8.507059e+37 }
  0xe8   :  { %v683_v17 = vsub.f32 1.0, %v682_v14  ;;  %v930_v21 = vand.u32 2147483647, %v1873_v60  ;;  %v1151_v22 = vmul.f32 %v1119_v11, %v425_v53  ;;  %v1351_v19 = vmul.f32 -1.442695, %v467_v6  ;;  %v429_v14 = vpop.f32.mrf.mxu3 }
  0xe9   :  { %v1471_v24 = vpop.eup %1470  ;;  %v909_v9 = vmul.f32 %v1467_v0, %v908_v2  ;;  %vm912_vm0 = vweird.f32 %v1467_v0  ;;  %vm687_vm1 = vweird.f32 %v1884_v7  ;;  %v1913_v26 = vadd.f32 %v345_v55, %v1682_v1  ;;  %v347_v40 = vpop.f32.mrf.mxu2 }
  0xea   :  { %v1473_v29 = vpop.eup %1472  ;;  %v679_v31 = vsel %vm1865_vm10, %v678_v10, %v674_v48  ;;  %v684_v33 = vmul.f32 %v1884_v7, %v683_v17  ;;  %v1918_v34 = vadd.f32 1.0, %v1471_v24  ;;  %1183 = vst [vmem:[#allocation8 + $0x90] sm:$0xff] %v1151_v22  ;;  %1476 = vpow2.f32 %v1351_v19  ;;  %vm913_vm3 = vmor %vm911_vm11, %vm912_vm0 }
  0xeb   :  { %v910_v27 = vadd.f32 %v1467_v0, %v909_v9  ;;  %v922_v35 = vmul.f32 %v1473_v29, %v1873_v60  ;;  %vm926_vm2 = vweird.f32 %v1873_v60  ;;  %v483_v39 = vmul.f32 %v1687_v3, %v1913_v26  ;;  %vm1939_vm5 = vmor %vm686_vm14, %vm687_vm1  ;;  %v310_v2 = vpop.f32.mrf.mxu0 }
  0xec   :  { %v685_v37 = vadd.f32 %v1884_v7, %v684_v33  ;;  %vm1928_vm4 = vcmp.eq.f32.partialorder %v930_v21, 8.507059e+37  ;;  %v932_v44 = vand.u32 2147483648, %v1873_v60  ;;  %1478 = vrcp.f32 %v1918_v34 }
  0xed   :  { %v1475_v45 = vpop.eup %1474  ;;  %v1104_v46 = vmul.f32 %v679_v31, %v1734_v47  ;;  %v914_v49 = vsel %vm913_vm3, %v1467_v0, %v910_v27  ;;  %v923_v51 = vsub.f32 1.0, %v922_v35  ;;  %v1367_v8 = vmul.f32 -1.442695, %v483_v39  ;;  %v389_v0 = vpop.f32.mrf.mxu1 }
  0xee   :  { %v919_v52 = vsel %vm1896_vm13, %v918_v13, %v914_v49  ;;  %v689_v53 = vsel %vm1939_vm5, %v1884_v7, %v685_v37  ;;  %v1948_v55 = vadd.f32 1.0, %v1475_v45  ;;  %v1951_v47 = vadd.f32 %v307_v23, %v1682_v1 }
  0xef   :  { %v1120_v56 = vmul.f32 %v919_v52, %v1775_v25  ;;  %v924_v57 = vmul.f32 %v1473_v29, %v923_v51  ;;  %vm927_vm6 = vweird.f32 %v1473_v29  ;;  %v705_v58 = vand.u32 2147483647, %v1918_v34 }
  0xf0   :  { %v1477_v59 = vpop.eup %1476  ;;  %v707_v61 = vand.u32 2147483648, %v1918_v34  ;;  %1480 = vrcp.f32 %v1948_v55  ;;  %v387_v62 = vadd.f32 %v386_v15, %v1716_v28  ;;  %v427_v63 = vadd.f32 %v426_v4, %v1716_v28  ;;  %vm928_vm7 = vmor %vm926_vm2, %vm927_vm6 }
  0xf1   :  { %v694_v11 = vsel %vm1906_vm15, %v693_v16, %v689_v53  ;;  %v925_v5 = vadd.f32 %v1473_v29, %v924_v57  ;;  %v1961_v6 = vadd.f32 1.0, %v1477_v59  ;;  %1482 = vpow2.f32 %v1367_v8  ;;  %v350_v22 = vpop.f32.mrf.mxu2 }
  0xf2   :  { %v1479_v25 = vpop.eup %1478  ;;  %v933_v7 = vor.u32 1.1754944e-38, %v932_v44  ;;  %v1136_v10 = vmul.f32 %v1104_v46, %v387_v62  ;;  %v1152_v41 = vmul.f32 %v1120_v56, %v427_v63  ;;  %v468_v54 = vmul.f32 %v1687_v3, %v1951_v47  ;;  %v431_v62 = vpop.f32.mrf.mxu3 }
  0xf3   :  { %v929_v38 = vsel %vm928_vm7, %v1473_v29, %v925_v5  ;;  %v697_v12 = vmul.f32 %v1479_v25, %v1918_v34  ;;  %vm701_vm8 = vweird.f32 %v1918_v34  ;;  %vm1969_vm9 = vcmp.eq.f32.partialorder %v705_v58, 8.507059e+37  ;;  %v312_v5 = vpop.f32.mrf.mxu0 }
  0xf4   :  { %v1105_v15 = vmul.f32 %v694_v11, %v1782_v30  ;;  %v934_v60 = vsel %vm1928_vm4, %v933_v7, %v929_v38  ;;  %v708_v48 = vor.u32 1.1754944e-38, %v707_v61  ;;  %1484 = vrcp.f32 %v1961_v6  ;;  %1168 = vst [vmem:[#allocation8 + $0x18] sm:$0xff] %v1136_v10 }
  0xf5   :  { %v1121_v16 = vmul.f32 %v934_v60, %v1807_v36  ;;  %v698_v17 = vsub.f32 1.0, %v697_v12  ;;  %vm941_vm10 = vweird.f32 %v1948_v55  ;;  %v945_v18 = vand.u32 2147483647, %v1948_v55  ;;  %1184 = vst [vmem:[#allocation8 + $0x98] sm:$0xff] %v1152_v41  ;;  %v391_v49 = vpop.f32.mrf.mxu1 }
  0xf6   :  { %v1352_v21 = vmul.f32 -1.442695, %v468_v54  ;;  %v1481_v19 = vpop.eup %1480  ;;  %v947_v30 = vand.u32 2147483648, %v1948_v55  ;;  %v1982_v24 = vadd.f32 %v347_v40, %v1682_v1  ;;  %v390_v9 = vadd.f32 %v389_v0, %v1716_v28 }
  0xf7   :  { %v430_v4 = vadd.f32 %v429_v14, %v1716_v28  ;;  %v1483_v29 = vpop.eup %1482  ;;  %v699_v36 = vmul.f32 %v1479_v25, %v698_v17  ;;  %vm702_vm11 = vweird.f32 %v1479_v25  ;;  %v937_v31 = vmul.f32 %v1481_v19, %v1948_v55 }
  0xf8   :  { %v720_v33 = vand.u32 2147483647, %v1961_v6  ;;  %v1988_v23 = vadd.f32 1.0, %v1483_v29  ;;  %1486 = vpow2.f32 %v1352_v21  ;;  %v484_v27 = vmul.f32 %v1687_v3, %v1982_v24  ;;  %vm703_vm12 = vmor %vm701_vm8, %vm702_vm11 }
  0xf9   :  { %v1137_v35 = vmul.f32 %v1105_v15, %v390_v9  ;;  %v700_v39 = vadd.f32 %v1479_v25, %v699_v36  ;;  %v938_v40 = vsub.f32 1.0, %v937_v31  ;;  %v1153_v37 = vmul.f32 %v1121_v16, %v430_v4  ;;  %v352_v41 = vpop.f32.mrf.mxu2 }
  0xfa   :  { %v1993_v42 = vadd.f32 %v310_v2, %v1682_v1  ;;  %v1485_v44 = vpop.eup %1484  ;;  %vm1997_vm13 = vcmp.eq.f32.partialorder %v945_v18, 8.507059e+37  ;;  %v948_v46 = vor.u32 1.1754944e-38, %v947_v30  ;;  %vm716_vm14 = vweird.f32 %v1961_v6 }
  0xfb   :  { %1488 = vrcp.f32 %v1988_v23  ;;  %1169 = vst [vmem:[#allocation8 + $0x20] sm:$0xff] %v1137_v35  ;;  %v704_v32 = vsel %vm703_vm12, %v1479_v25, %v700_v39  ;;  %v939_v51 = vmul.f32 %v1481_v19, %v938_v40  ;;  %vm942_vm15 = vweird.f32 %v1481_v19  ;;  %v434_v39 = vpop.f32.mrf.mxu3  ;;  %v315_v45 = vpop.f32.mrf.mxu0 }
  0xfc   :  { %v712_v8 = vmul.f32 %v1485_v44, %v1961_v6  ;;  %1185 = vst [vmem:[#allocation8 + $0xa0] sm:$0xff] %v1153_v37  ;;  %v709_v34 = vsel %vm1969_vm9, %v708_v48, %v704_v32  ;;  %vm2006_vm0 = vcmp.eq.f32.partialorder %v720_v33, 8.507059e+37  ;;  %v722_v53 = vand.u32 2147483648, %v1961_v6  ;;  %vm943_vm1 = vmor %vm941_vm10, %vm942_vm15 }
  0xfd   :  { %v1368_v56 = vmul.f32 -1.442695, %v484_v27  ;;  %v1106_v57 = vmul.f32 %v709_v34, %v1831_v20  ;;  %v940_v58 = vadd.f32 %v1481_v19, %v939_v51  ;;  %v469_v61 = vmul.f32 %v1687_v3, %v1993_v42  ;;  %v394_v30 = vpop.f32.mrf.mxu1 }
  0xfe   :  { %v713_v59 = vsub.f32 1.0, %v712_v8  ;;  %v1487_v63 = vpop.eup %1486  ;;  %vm717_vm2 = vweird.f32 %v1485_v44  ;;  %v2017_v0 = vadd.f32 %v350_v22, %v1682_v1  ;;  %v392_v11 = vadd.f32 %v391_v49, %v1716_v28 }
  0xff   :  { %1490 = vpow2.f32 %v1368_v56  ;;  %v944_v25 = vsel %vm943_vm1, %v1481_v19, %v940_v58  ;;  %v2020_v7 = vadd.f32 1.0, %v1487_v63  ;;  %v1353_v10 = vmul.f32 -1.442695, %v469_v61  ;;  %vm718_vm3 = vmor %vm716_vm14, %vm717_vm2 }
 0x100   :  { %v714_v20 = vmul.f32 %v1485_v44, %v713_v59  ;;  %v949_v38 = vsel %vm1997_vm13, %v948_v46, %v944_v25  ;;  %v723_v55 = vor.u32 1.1754944e-38, %v722_v53  ;;  %v485_v12 = vmul.f32 %v1687_v3, %v2017_v0 }
 0x101   :  { %v1489_v54 = vpop.eup %1488  ;;  %v1138_v13 = vmul.f32 %v1106_v57, %v392_v11  ;;  %v1122_v14 = vmul.f32 %v949_v38, %v1856_v43  ;;  %v960_v48 = vand.u32 2147483647, %v1988_v23  ;;  %v962_v2 = vand.u32 2147483648, %v1988_v23  ;;  %v355_v34 = vpop.f32.mrf.mxu2 }
 0x102   :  { %v715_v15 = vadd.f32 %v1485_v44, %v714_v20  ;;  %v952_v60 = vmul.f32 %v1489_v54, %v1988_v23  ;;  %1492 = vrcp.f32 %v2020_v7  ;;  %v432_v16 = vadd.f32 %v431_v62, %v1716_v28 }
 0x103   :  { %1170 = vst [vmem:[#allocation8 + $0x28] sm:$0xff] %v1138_v13  ;;  %v2036_v17 = vadd.f32 %v312_v5, %v1682_v1  ;;  %1494 = vpow2.f32 %v1353_v10  ;;  %v1369_v21 = vmul.f32 -1.442695, %v485_v12  ;;  %vm957_vm4 = vweird.f32 %v1489_v54 }
 0x104   :  { %v719_v43 = vsel %vm718_vm3, %v1485_v44, %v715_v15  ;;  %v953_v18 = vsub.f32 1.0, %v952_v60  ;;  %v1154_v6 = vmul.f32 %v1122_v14, %v432_v16  ;;  %vm956_vm5 = vweird.f32 %v1988_v23 }
 0x105   :  { %v1491_v22 = vpop.eup %1490  ;;  %v724_v19 = vsel %vm2006_vm0, %v723_v55, %v719_v43  ;;  %1496 = vpow2.f32 %v1369_v21  ;;  %v470_v36 = vmul.f32 %v1687_v3, %v2036_v17  ;;  %v2047_v31 = vadd.f32 %v352_v41, %v1682_v1  ;;  %vm958_vm7 = vmor %vm956_vm5, %vm957_vm4  ;;  %v396_v38 = vpop.f32.mrf.mxu1 }
 0x106   :  { %v1107_v9 = vmul.f32 %v724_v19, %v1860_v50  ;;  %v954_v4 = vmul.f32 %v1489_v54, %v953_v18  ;;  %v2041_v29 = vadd.f32 1.0, %v1491_v22  ;;  %1186 = vst [vmem:[#allocation8 + $0xa8] sm:$0xff] %v1154_v6  ;;  %v395_v33 = vadd.f32 %v394_v30, %v1716_v28  ;;  %v436_v21 = vpop.f32.mrf.mxu3  ;;  %v317_v30 = vpop.f32.mrf.mxu0 }
 0x107   :  { %vm2050_vm6 = vcmp.eq.f32.partialorder %v960_v48, 8.507059e+37  ;;  %v963_v50 = vor.u32 1.1754944e-38, %v962_v2  ;;  %vm731_vm8 = vweird.f32 %v2020_v7  ;;  %v1354_v23 = vmul.f32 -1.442695, %v470_v36 }
 0x108   :  { %v955_v27 = vadd.f32 %v1489_v54, %v954_v4  ;;  %1498 = vrcp.f32 %v2041_v29  ;;  %v1493_v40 = vpop.eup %1492  ;;  %v486_v37 = vmul.f32 %v1687_v3, %v2047_v31  ;;  %v1139_v44 = vmul.f32 %v1107_v9, %v395_v33 }
 0x109   :  { %v1495_v46 = vpop.eup %1494  ;;  %v727_v32 = vmul.f32 %v1493_v40, %v2020_v7  ;;  %v735_v51 = vand.u32 2147483647, %v2020_v7  ;;  %v435_v8 = vadd.f32 %v434_v39, %v1716_v28  ;;  %v737_v53 = vand.u32 2147483648, %v2020_v7  ;;  %v357_v35 = vpop.f32.mrf.mxu2 }
 0x10a   :  { %v959_v49 = vsel %vm958_vm7, %v1489_v54, %v955_v27  ;;  %v2065_v56 = vadd.f32 1.0, %v1495_v46  ;;  %1500 = vpow2.f32 %v1354_v23  ;;  %1171 = vst [vmem:[#allocation8 + $0x30] sm:$0xff] %v1139_v44  ;;  %v975_v61 = vand.u32 2147483647, %v2041_v29 }
 0x10b   :  { %v964_v52 = vsel %vm2050_vm6, %v963_v50, %v959_v49  ;;  %v1497_v57 = vpop.eup %1496  ;;  %v728_v59 = vsub.f32 1.0, %v727_v32  ;;  %v1370_v62 = vmul.f32 -1.442695, %v486_v37  ;;  %vm732_vm9 = vweird.f32 %v1493_v40 }
 0x10c   :  { %v1123_v58 = vmul.f32 %v964_v52, %v1913_v26  ;;  %v977_v63 = vand.u32 2147483648, %v2041_v29  ;;  %1502 = vrcp.f32 %v2065_v56  ;;  %v2072_v11 = vadd.f32 %v315_v45, %v1682_v1  ;;  %vm733_vm12 = vmor %vm731_vm8, %vm732_vm9 }
 0x10d   :  { %v729_v25 = vmul.f32 %v1493_v40, %v728_v59  ;;  %v2074_v20 = vadd.f32 1.0, %v1497_v57  ;;  %1504 = vpow2.f32 %v1370_v62  ;;  %vm2076_vm10 = vcmp.eq.f32.partialorder %v735_v51, 8.507059e+37  ;;  %v399_v57 = vpop.f32.mrf.mxu1 }
 0x10e   :  { %v1499_v5 = vpop.eup %1498  ;;  %v1155_v10 = vmul.f32 %v1123_v58, %v435_v8  ;;  %v738_v41 = vor.u32 1.1754944e-38, %v737_v53  ;;  %vm971_vm11 = vweird.f32 %v2041_v29  ;;  %v750_v12 = vand.u32 2147483647, %v2065_v56 }
 0x10f   :  { %v967_v54 = vmul.f32 %v1499_v5, %v2041_v29  ;;  %v730_v55 = vadd.f32 %v1493_v40, %v729_v25  ;;  %v752_v13 = vand.u32 2147483648, %v2065_v56  ;;  %1506 = vrcp.f32 %v2074_v20 }
 0x110   :  { %1187 = vst [vmem:[#allocation8 + $0xb0] sm:$0xff] %v1155_v10  ;;  %v1501_v14 = vpop.eup %1500  ;;  %vm2088_vm13 = vcmp.eq.f32.partialorder %v975_v61, 8.507059e+37  ;;  %v978_v48 = vor.u32 1.1754944e-38, %v977_v63  ;;  %v471_v2 = vmul.f32 %v1687_v3, %v2072_v11  ;;  %vm746_vm14 = vweird.f32 %v2065_v56 }
 0x111   :  { %v968_v15 = vsub.f32 1.0, %v967_v54  ;;  %v734_v16 = vsel %vm733_vm12, %v1493_v40, %v730_v55  ;;  %v2095_v43 = vadd.f32 1.0, %v1501_v14  ;;  %v2098_v18 = vadd.f32 %v355_v34, %v1682_v1  ;;  %v320_v14 = vpop.f32.mrf.mxu0 }
 0x112   :  { %v1503_v7 = vpop.eup %1502  ;;  %v739_v22 = vsel %vm2076_vm10, %v738_v41, %v734_v16  ;;  %vm972_vm15 = vweird.f32 %v1499_v5  ;;  %v1355_v6 = vmul.f32 -1.442695, %v471_v2  ;;  %vm2103_vm0 = vcmp.eq.f32.partialorder %v750_v12, 8.507059e+37  ;;  %v360_v16 = vpop.f32.mrf.mxu2 }
 0x113   :  { %v969_v19 = vmul.f32 %v1499_v5, %v968_v15  ;;  %v1505_v9 = vpop.eup %1504  ;;  %v742_v4 = vmul.f32 %v1503_v7, %v2065_v56  ;;  %v753_v33 = vor.u32 1.1754944e-38, %v752_v13  ;;  %v990_v27 = vand.u32 2147483647, %v2074_v20  ;;  %vm973_vm1 = vmor %vm971_vm11, %vm972_vm15 }
 0x114   :  { %1508 = vrcp.f32 %v2095_v43  ;;  %v1108_v50 = vmul.f32 %v739_v22, %v1951_v47  ;;  %v992_v40 = vand.u32 2147483648, %v2074_v20  ;;  %v397_v23 = vadd.f32 %v396_v38, %v1716_v28  ;;  %v439_v38 = vpop.f32.mrf.mxu3 }
 0x115   :  { %v970_v39 = vadd.f32 %v1499_v5, %v969_v19  ;;  %v1507_v37 = vpop.eup %1506  ;;  %v743_v44 = vsub.f32 1.0, %v742_v4  ;;  %v2115_v45 = vadd.f32 1.0, %v1505_v9  ;;  %1510 = vpow2.f32 %v1355_v6 }
 0x116   :  { %v487_v46 = vmul.f32 %v1687_v3, %v2098_v18  ;;  %vm747_vm2 = vweird.f32 %v1503_v7  ;;  %v982_v47 = vmul.f32 %v1507_v37, %v2074_v20  ;;  %v765_v32 = vand.u32 2147483647, %v2095_v43 }
 0x117   :  { %v974_v49 = vsel %vm973_vm1, %v1499_v5, %v970_v39  ;;  %v744_v8 = vmul.f32 %v1503_v7, %v743_v44  ;;  %v767_v29 = vand.u32 2147483648, %v2095_v43  ;;  %1512 = vrcp.f32 %v2115_v45  ;;  %vm748_vm5 = vmor %vm746_vm14, %vm747_vm2 }
 0x118   :  { %v979_v51 = vsel %vm2088_vm13, %v978_v48, %v974_v49  ;;  %v983_v34 = vsub.f32 1.0, %v982_v47  ;;  %vm986_vm3 = vweird.f32 %v2074_v20  ;;  %vm2126_vm4 = vcmp.eq.f32.partialorder %v990_v27, 8.507059e+37 }
 0x119   :  { %v993_v53 = vor.u32 1.1754944e-38, %v992_v40  ;;  %v1124_v59 = vmul.f32 %v979_v51, %v1982_v24  ;;  %v745_v61 = vadd.f32 %v1503_v7, %v744_v8  ;;  %v1371_v62 = vmul.f32 -1.442695, %v487_v46 }
 0x11a   :  { %v1509_v58 = vpop.eup %1508  ;;  %v1140_v63 = vmul.f32 %v1108_v50, %v397_v23  ;;  %v984_v5 = vmul.f32 %v1507_v37, %v983_v34  ;;  %vm987_vm6 = vweird.f32 %v1507_v37  ;;  %vm761_vm7 = vweird.f32 %v2095_v43 }
 0x11b   :  { %v757_v25 = vmul.f32 %v1509_v58, %v2095_v43  ;;  %v1511_v10 = vpop.eup %1510  ;;  %v749_v26 = vsel %vm748_vm5, %v1503_v7, %v745_v61  ;;  %vm2136_vm8 = vcmp.eq.f32.partialorder %v765_v32, 8.507059e+37  ;;  %v768_v24 = vor.u32 1.1754944e-38, %v767_v29  ;;  %vm988_vm9 = vmor %vm986_vm3, %vm987_vm6 }
 0x11c   :  { %1514 = vpow2.f32 %v1371_v62  ;;  %1172 = vst [vmem:[#allocation8 + $0x38] sm:$0xff] %v1140_v63  ;;  %v437_v54 = vadd.f32 %v436_v21, %v1716_v28  ;;  %v754_v56 = vsel %vm2103_vm0, %v753_v33, %v749_v26  ;;  %v985_v55 = vadd.f32 %v1507_v37, %v984_v5  ;;  %v441_v34 = vpop.f32.mrf.mxu3  ;;  %v362_v63 = vpop.f32.mrf.mxu2 }
 0x11d   :  { %v758_v12 = vsub.f32 1.0, %v757_v25  ;;  %v2143_v13 = vadd.f32 1.0, %v1511_v10  ;;  %v1513_v15 = vpop.eup %1512  ;;  %vm1001_vm10 = vweird.f32 %v2115_v45  ;;  %v2150_v48 = vadd.f32 %v317_v30, %v1682_v1 }
 0x11e   :  { %v1156_v60 = vmul.f32 %v1124_v59, %v437_v54  ;;  %v2153_v2 = vadd.f32 %v357_v35, %v1682_v1  ;;  %v989_v21 = vsel %vm988_vm9, %v1507_v37, %v985_v55  ;;  %vm762_vm11 = vweird.f32 %v1509_v58  ;;  %v401_v37 = vpop.f32.mrf.mxu1 }
 0x11f   :  { %v759_v7 = vmul.f32 %v1509_v58, %v758_v12  ;;  %v997_v22 = vmul.f32 %v1513_v15, %v2115_v45  ;;  %v1109_v19 = vmul.f32 %v754_v56, %v1993_v42  ;;  %v994_v20 = vsel %vm2126_vm4, %v993_v53, %v989_v21  ;;  %vm763_vm13 = vmor %vm761_vm7, %vm762_vm11 }
 0x120   :  { %v1005_v6 = vand.u32 2147483647, %v2115_v45  ;;  %1516 = vrcp.f32 %v2143_v13  ;;  %1188 = vst [vmem:[#allocation8 + $0xb8] sm:$0xff] %v1156_v60  ;;  %vm1002_vm12 = vweird.f32 %v1513_v15  ;;  %v1007_v4 = vand.u32 2147483648, %v2115_v45 }
 0x121   :  { %v760_v30 = vadd.f32 %v1509_v58, %v759_v7  ;;  %v998_v9 = vsub.f32 1.0, %v997_v22  ;;  %v780_v33 = vand.u32 2147483647, %v2143_v13  ;;  %v472_v42 = vmul.f32 %v1687_v3, %v2150_v48  ;;  %vm1003_vm15 = vmor %vm1001_vm10, %vm1002_vm12 }
 0x122   :  { %v1515_v36 = vpop.eup %1514  ;;  %v488_v27 = vmul.f32 %v1687_v3, %v2153_v2  ;;  %v400_v35 = vadd.f32 %v399_v57, %v1716_v28  ;;  %v1125_v50 = vmul.f32 %v994_v20, %v2017_v0  ;;  %v782_v43 = vand.u32 2147483648, %v2143_v13 }
 0x123   :  { %v764_v39 = vsel %vm763_vm13, %v1509_v58, %v760_v30  ;;  %v999_v40 = vmul.f32 %v1513_v15, %v998_v9  ;;  %v2171_v23 = vadd.f32 1.0, %v1515_v36  ;;  %v1356_v44 = vmul.f32 -1.442695, %v472_v42  ;;  %v322_v58 = vpop.f32.mrf.mxu0 }
 0x124   :  { %v1372_v46 = vmul.f32 -1.442695, %v488_v27  ;;  %v1141_v49 = vmul.f32 %v1109_v19, %v400_v35  ;;  %v769_v47 = vsel %vm2136_vm8, %v768_v24, %v764_v39  ;;  %vm2176_vm14 = vcmp.eq.f32.partialorder %v1005_v6, 8.507059e+37 }
 0x125   :  { %v1000_v32 = vadd.f32 %v1513_v15, %v999_v40  ;;  %1518 = vrcp.f32 %v2171_v23  ;;  %v1008_v8 = vor.u32 1.1754944e-38, %v1007_v4  ;;  %vm776_vm0 = vweird.f32 %v2143_v13 }
 0x126   :  { %v1517_v0 = vpop.eup %1516  ;;  %1520 = vpow2.f32 %v1356_v44  ;;  %1173 = vst [vmem:[#allocation8 + $0x40] sm:$0xff] %v1141_v49  ;;  %v440_v29 = vadd.f32 %v439_v38, %v1716_v28  ;;  %vm2187_vm1 = vcmp.eq.f32.partialorder %v780_v33, 8.507059e+37  ;;  %v1110_v45 = vmul.f32 %v769_v47, %v2036_v17  ;;  %v404_v6 = vpop.f32.mrf.mxu1 }
 0x127   :  { %v1004_v52 = vsel %vm1003_vm15, %v1513_v15, %v1000_v32  ;;  %v772_v53 = vmul.f32 %v1517_v0, %v2143_v13  ;;  %1522 = vpow2.f32 %v1372_v46  ;;  %v783_v61 = vor.u32 1.1754944e-38, %v782_v43 }
 0x128   :  { %v1009_v59 = vsel %vm2176_vm14, %v1008_v8, %v1004_v52  ;;  %v1157_v62 = vmul.f32 %v1125_v50, %v440_v29  ;;  %v2196_v10 = vadd.f32 %v320_v14, %v1682_v1  ;;  %v2199_v26 = vadd.f32 %v360_v16, %v1682_v1  ;;  %v444_v50 = vpop.f32.mrf.mxu3 }
 0x129   :  { %v1126_v5 = vmul.f32 %v1009_v59, %v2047_v31  ;;  %v773_v25 = vsub.f32 1.0, %v772_v53  ;;  %vm777_vm2 = vweird.f32 %v1517_v0  ;;  %v402_v41 = vadd.f32 %v401_v37, %v1716_v28 }
 0x12a   :  { %1189 = vst [vmem:[#allocation8 + $0xc0] sm:$0xff] %v1157_v62  ;;  %v442_v17 = vadd.f32 %v441_v34, %v1716_v28  ;;  %v2204_v24 = vadd.f32 %v322_v58, %v1682_v1  ;;  %v473_v31 = vmul.f32 %v1687_v3, %v2196_v10  ;;  %v489_v56 = vmul.f32 %v1687_v3, %v2199_v26  ;;  %vm778_vm3 = vmor %vm776_vm0, %vm777_vm2 }
 0x12b   :  { %v1519_v54 = vpop.eup %1518  ;;  %v774_v38 = vmul.f32 %v1517_v0, %v773_v25  ;;  %v2211_v55 = vadd.f32 %v362_v63, %v1682_v1  ;;  %v1020_v15 = vand.u32 2147483647, %v2171_v23  ;;  %v1142_v60 = vmul.f32 %v1110_v45, %v402_v41  ;;  %v325_v43 = vpop.f32.mrf.mxu0 }
 0x12c   :  { %v1521_v12 = vpop.eup %1520  ;;  %v1012_v14 = vmul.f32 %v1519_v54, %v2171_v23  ;;  %v1158_v16 = vmul.f32 %v1126_v5, %v442_v17  ;;  %v1022_v22 = vand.u32 2147483648, %v2171_v23  ;;  %v1357_v20 = vmul.f32 -1.442695, %v473_v31 }
 0x12d   :  { %v1523_v21 = vpop.eup %1522  ;;  %v775_v7 = vadd.f32 %v1517_v0, %v774_v38  ;;  %v2216_v19 = vadd.f32 1.0, %v1521_v12  ;;  %v1373_v4 = vmul.f32 -1.442695, %v489_v56  ;;  %1174 = vst [vmem:[#allocation8 + $0x48] sm:$0xff] %v1142_v60  ;;  %v405_v36 = vadd.f32 %v404_v6, %v1716_v28 }
 0x12e   :  { %v1013_v30 = vsub.f32 1.0, %v1012_v14  ;;  %v2221_v9 = vadd.f32 1.0, %v1523_v21  ;;  %1190 = vst [vmem:[#allocation8 + $0xc8] sm:$0xff] %v1158_v16  ;;  %v474_v42 = vmul.f32 %v1687_v3, %v2204_v24  ;;  %v490_v27 = vmul.f32 %v1687_v3, %v2211_v55  ;;  %v406_v38 = vpop.f32.mrf.mxu1 }
 0x12f   :  { %v779_v33 = vsel %vm778_vm3, %v1517_v0, %v775_v7  ;;  %1524 = vrcp.f32 %v2216_v19  ;;  %vm1017_vm4 = vweird.f32 %v1519_v54  ;;  %vm1016_vm5 = vweird.f32 %v2171_v23  ;;  %v365_v0 = vpop.f32.mrf.mxu2 }
 0x130   :  { %v784_v13 = vsel %vm2187_vm1, %v783_v61, %v779_v33  ;;  %v1014_v35 = vmul.f32 %v1519_v54, %v1013_v30  ;;  %1526 = vrcp.f32 %v2221_v9  ;;  %v1023_v37 = vor.u32 1.1754944e-38, %v1022_v22  ;;  %vm1018_vm6 = vmor %vm1016_vm5, %vm1017_vm4  ;;  %v446_v14 = vpop.f32.mrf.mxu3 }
 0x131   :  { %v1111_v39 = vmul.f32 %v784_v13, %v2072_v11  ;;  %1528 = vpow2.f32 %v1357_v20  ;;  %v795_v44 = vand.u32 2147483647, %v2216_v19  ;;  %v1358_v46 = vmul.f32 -1.442695, %v474_v42 }
 0x132   :  { %v1015_v40 = vadd.f32 %v1519_v54, %v1014_v35  ;;  %1530 = vpow2.f32 %v1373_v4  ;;  %v1374_v49 = vmul.f32 -1.442695, %v490_v27  ;;  %vm1021_vm7 = vcmp.eq.f32.partialorder %v1020_v15, 8.507059e+37 }
 0x133   :  { %v1143_v32 = vmul.f32 %v1111_v39, %v405_v36  ;;  %v445_v51 = vadd.f32 %v444_v50, %v1716_v28  ;;  %v797_v29 = vand.u32 2147483648, %v2216_v19  ;;  %1532 = vpow2.f32 %v1358_v46  ;;  %v327_v33 = vpop.f32.mrf.mxu0 }
 0x134   :  { %v1019_v47 = vsel %vm1018_vm6, %v1519_v54, %v1015_v40  ;;  %v2238_v23 = vadd.f32 %v325_v43, %v1682_v1  ;;  %v1035_v57 = vand.u32 2147483647, %v2221_v9  ;;  %1534 = vpow2.f32 %v1374_v49 }
 0x135   :  { %v1525_v8 = vpop.eup %1524  ;;  %v1024_v11 = vsel %vm1021_vm7, %v1023_v37, %v1019_v47  ;;  %1175 = vst [vmem:[#allocation8 + $0x50] sm:$0xff] %v1143_v32  ;;  %vm791_vm8 = vweird.f32 %v2216_v19  ;;  %vm2244_vm9 = vcmp.eq.f32.partialorder %v795_v44, 8.507059e+37  ;;  %v1037_v59 = vand.u32 2147483648, %v2221_v9 }
 0x136   :  { %v1527_v34 = vpop.eup %1526  ;;  %v1127_v52 = vmul.f32 %v1024_v11, %v2098_v18  ;;  %v787_v53 = vmul.f32 %v1525_v8, %v2216_v19  ;;  %vm1031_vm10 = vweird.f32 %v2221_v9  ;;  %v2252_v63 = vadd.f32 %v365_v0, %v1682_v1 }
 0x137   :  { %v1027_v45 = vmul.f32 %v1527_v34, %v2221_v9  ;;  %v1529_v61 = vpop.eup %1528  ;;  %v798_v25 = vor.u32 1.1754944e-38, %v797_v29  ;;  %v475_v54 = vmul.f32 %v1687_v3, %v2238_v23  ;;  %vm792_vm11 = vweird.f32 %v1525_v8  ;;  %v367_v19 = vpop.f32.mrf.mxu2 }
 0x138   :  { %v788_v62 = vsub.f32 1.0, %v787_v53  ;;  %v1159_v18 = vmul.f32 %v1127_v52, %v445_v51  ;;  %v1531_v5 = vpop.eup %1530  ;;  %v2254_v17 = vadd.f32 1.0, %v1529_v61  ;;  %vm2258_vm12 = vcmp.eq.f32.partialorder %v1035_v57, 8.507059e+37  ;;  %vm793_vm14 = vmor %vm791_vm8, %vm792_vm11  ;;  %v409_v53 = vpop.f32.mrf.mxu1 }
 0x139   :  { %v1028_v41 = vsub.f32 1.0, %v1027_v45  ;;  %v2262_v12 = vadd.f32 1.0, %v1531_v5  ;;  %v1533_v15 = vpop.eup %1532  ;;  %vm1032_vm13 = vweird.f32 %v1527_v34  ;;  %v1038_v16 = vor.u32 1.1754944e-38, %v1037_v59 }
 0x13a   :  { %v789_v31 = vmul.f32 %v1525_v8, %v788_v62  ;;  %1191 = vst [vmem:[#allocation8 + $0xd0] sm:$0xff] %v1159_v18  ;;  %1536 = vrcp.f32 %v2254_v17  ;;  %v1535_v21 = vpop.eup %1534  ;;  %v491_v22 = vmul.f32 %v1687_v3, %v2252_v63  ;;  %v407_v20 = vadd.f32 %v406_v38, %v1716_v28  ;;  %vm1033_vm15 = vmor %vm1031_vm10, %vm1032_vm13 }
 0x13b   :  { %v1029_v60 = vmul.f32 %v1527_v34, %v1028_v41  ;;  %1538 = vrcp.f32 %v2262_v12  ;;  %v810_v30 = vand.u32 2147483647, %v2254_v17  ;;  %v1359_v4 = vmul.f32 -1.442695, %v475_v54  ;;  %v449_v54 = vpop.f32.mrf.mxu3 }
 0x13c   :  { %v790_v7 = vadd.f32 %v1525_v8, %v789_v31  ;;  %v447_v36 = vadd.f32 %v446_v14, %v1716_v28  ;;  %v812_v27 = vand.u32 2147483648, %v2254_v17  ;;  %v2278_v13 = vadd.f32 1.0, %v1533_v15 }
 0x13d   :  { %v1030_v6 = vadd.f32 %v1527_v34, %v1029_v60  ;;  %v2280_v35 = vadd.f32 1.0, %v1535_v21  ;;  %v1050_v40 = vand.u32 2147483647, %v2262_v12  ;;  %v1052_v37 = vand.u32 2147483648, %v2262_v12 }
 0x13e   :  { %v794_v42 = vsel %vm793_vm14, %v1525_v8, %v790_v7  ;;  %1540 = vrcp.f32 %v2278_v13  ;;  %v1375_v9 = vmul.f32 -1.442695, %v491_v22  ;;  %v2290_v44 = vadd.f32 %v327_v33, %v1682_v1 }
 0x13f   :  { %v799_v50 = vsel %vm2244_vm9, %v798_v25, %v794_v42  ;;  %v1034_v39 = vsel %vm1033_vm15, %v1527_v34, %v1030_v6  ;;  %1542 = vrcp.f32 %v2280_v35  ;;  %v2296_v32 = vadd.f32 %v367_v19, %v1682_v1 }
 0x140   :  { %v1039_v43 = vsel %vm2258_vm12, %v1038_v16, %v1034_v39  ;;  %v1537_v46 = vpop.eup %1536  ;;  %v1112_v49 = vmul.f32 %v799_v50, %v2150_v48  ;;  %vm806_vm0 = vweird.f32 %v2254_v17  ;;  %vm2300_vm1 = vcmp.eq.f32.partialorder %v810_v30, 8.507059e+37 }
 0x141   :  { %v1128_v47 = vmul.f32 %v1039_v43, %v2153_v2  ;;  %v1539_v51 = vpop.eup %1538  ;;  %v802_v0 = vmul.f32 %v1537_v46, %v2254_v17  ;;  %vm1046_vm2 = vweird.f32 %v2262_v12  ;;  %v813_v11 = vor.u32 1.1754944e-38, %v812_v27 }
 0x142   :  { %v1042_v48 = vmul.f32 %v1539_v51, %v2262_v12  ;;  %vm2306_vm3 = vcmp.eq.f32.partialorder %v1050_v40, 8.507059e+37  ;;  %v1053_v1 = vor.u32 1.1754944e-38, %v1052_v37  ;;  %v825_v34 = vand.u32 2147483647, %v2278_v13  ;;  %v411_v37 = vpop.f32.mrf.mxu1 }
 0x143   :  { %v803_v29 = vsub.f32 1.0, %v802_v0  ;;  %v827_v52 = vand.u32 2147483648, %v2278_v13  ;;  %1544 = vpow2.f32 %v1359_v4  ;;  %vm821_vm4 = vweird.f32 %v2278_v13 }
 0x144   :  { %v1043_v57 = vsub.f32 1.0, %v1042_v48  ;;  %1546 = vpow2.f32 %v1375_v9  ;;  %v1144_v58 = vmul.f32 %v1112_v49, %v407_v20  ;;  %v1160_v45 = vmul.f32 %v1128_v47, %v447_v36  ;;  %v1541_v59 = vpop.eup %1540 }
 0x145   :  { %v804_v61 = vmul.f32 %v1537_v46, %v803_v29  ;;  %vm807_vm5 = vweird.f32 %v1537_v46  ;;  %vm1061_vm6 = vweird.f32 %v2280_v35  ;;  %v476_v62 = vmul.f32 %v1687_v3, %v2290_v44  ;;  %v1543_v18 = vpop.eup %1542 }
 0x146   :  { %v1044_v5 = vmul.f32 %v1539_v51, %v1043_v57  ;;  %vm1047_vm7 = vweird.f32 %v1539_v51  ;;  %v817_v25 = vmul.f32 %v1541_v59, %v2278_v13  ;;  %v1065_v41 = vand.u32 2147483647, %v2280_v35  ;;  %1176 = vst [vmem:[#allocation8 + $0x58] sm:$0xff] %v1144_v58  ;;  %vm808_vm9 = vmor %vm806_vm0, %vm807_vm5 }
 0x147   :  { %v805_v38 = vadd.f32 %v1537_v46, %v804_v61  ;;  %vm2318_vm8 = vcmp.eq.f32.partialorder %v825_v34, 8.507059e+37  ;;  %v1057_v56 = vmul.f32 %v1543_v18, %v2280_v35  ;;  %1192 = vst [vmem:[#allocation8 + $0xd8] sm:$0xff] %v1160_v45  ;;  %v1360_v14 = vmul.f32 -1.442695, %v476_v62  ;;  %vm1048_vm10 = vmor %vm1046_vm2, %vm1047_vm7 }
 0x148   :  { %v1045_v15 = vadd.f32 %v1539_v51, %v1044_v5  ;;  %v818_v60 = vsub.f32 1.0, %v817_v25  ;;  %v1067_v16 = vand.u32 2147483648, %v2280_v35  ;;  %v492_v21 = vmul.f32 %v1687_v3, %v2296_v32 }
 0x149   :  { %v1545_v7 = vpop.eup %1544  ;;  %v809_v22 = vsel %vm808_vm9, %v1537_v46, %v805_v38  ;;  %vm822_vm11 = vweird.f32 %v1541_v59  ;;  %v1058_v20 = vsub.f32 1.0, %v1057_v56  ;;  %1548 = vpow2.f32 %v1360_v14 }
 0x14a   :  { %v1547_v6 = vpop.eup %1546  ;;  %v814_v17 = vsel %vm2300_vm1, %v813_v11, %v809_v22  ;;  %v1049_v30 = vsel %vm1048_vm10, %v1539_v51, %v1045_v15  ;;  %v819_v4 = vmul.f32 %v1541_v59, %v818_v60  ;;  %v2334_v36 = vadd.f32 1.0, %v1545_v7  ;;  %vm823_vm13 = vmor %vm821_vm4, %vm822_vm11  ;;  %v451_v11 = vpop.f32.mrf.mxu3 }
 0x14b   :  { %v1054_v3 = vsel %vm2306_vm3, %v1053_v1, %v1049_v30  ;;  %v1059_v33 = vmul.f32 %v1543_v18, %v1058_v20  ;;  %vm1062_vm12 = vweird.f32 %v1543_v18  ;;  %v2338_v42 = vadd.f32 1.0, %v1547_v6  ;;  %v414_v25 = vpop.f32.mrf.mxu1 }
 0x14c   :  { %v820_v12 = vadd.f32 %v1541_v59, %v819_v4  ;;  %v828_v27 = vor.u32 1.1754944e-38, %v827_v52  ;;  %1550 = vrcp.f32 %v2334_v36  ;;  %v410_v19 = vadd.f32 %v409_v53, %v1716_v28  ;;  %vm1063_vm14 = vmor %vm1061_vm6, %vm1062_vm12 }
 0x14d   :  { %v1113_v50 = vmul.f32 %v814_v17, %v2196_v10  ;;  %v1060_v39 = vadd.f32 %v1543_v18, %v1059_v33  ;;  %1552 = vrcp.f32 %v2338_v42  ;;  %v1376_v40 = vmul.f32 -1.442695, %v492_v21 }
 0x14e   :  { %v1129_v43 = vmul.f32 %v1054_v3, %v2199_v26  ;;  %v824_v9 = vsel %vm823_vm13, %v1541_v59, %v820_v12  ;;  %v1068_v46 = vor.u32 1.1754944e-38, %v1067_v16  ;;  %v450_v49 = vadd.f32 %v449_v54, %v1716_v28 }
 0x14f   :  { %v1549_v47 = vpop.eup %1548  ;;  %v829_v10 = vsel %vm2318_vm8, %v828_v27, %v824_v9  ;;  %v1064_v13 = vsel %vm1063_vm14, %v1543_v18, %v1060_v39  ;;  %vm1066_vm15 = vcmp.eq.f32.partialorder %v1065_v41, 8.507059e+37  ;;  %v412_v8 = vadd.f32 %v411_v37, %v1716_v28 }
 0x150   :  { %v1114_v51 = vmul.f32 %v829_v10, %v2204_v24  ;;  %v1069_v0 = vsel %vm1066_vm15, %v1068_v46, %v1064_v13  ;;  %v2356_v48 = vadd.f32 1.0, %v1549_v47  ;;  %1554 = vpow2.f32 %v1376_v40 }
 0x151   :  { %v1130_v26 = vmul.f32 %v1069_v0, %v2211_v55  ;;  %v1145_v35 = vmul.f32 %v1113_v50, %v410_v19  ;;  %v1161_v1 = vmul.f32 %v1129_v43, %v450_v49  ;;  %v452_v24 = vadd.f32 %v451_v11, %v1716_v28 }
 0x152   :  { %v1551_v2 = vpop.eup %1550  ;;  %v1146_v29 = vmul.f32 %v1114_v51, %v412_v8  ;;  %1556 = vrcp.f32 %v2356_v48  ;;  %v840_v55 = vand.u32 2147483647, %v2334_v36  ;;  %vm836_vm0 = vweird.f32 %v2334_v36  ;;  %v454_v7 = vpop.f32.mrf.mxu3 }
 0x153   :  { %v1553_v34 = vpop.eup %1552  ;;  %v832_v52 = vmul.f32 %v1551_v2, %v2334_v36  ;;  %1177 = vst [vmem:[#allocation8 + $0x60] sm:$0xff] %v1145_v35  ;;  %v1162_v58 = vmul.f32 %v1130_v26, %v452_v24  ;;  %v842_v45 = vand.u32 2147483648, %v2334_v36  ;;  %vm837_vm1 = vweird.f32 %v1551_v2 }
 0x154   :  { %v1072_v53 = vmul.f32 %v1553_v34, %v2338_v42  ;;  %1193 = vst [vmem:[#allocation8 + $0xe0] sm:$0xff] %v1161_v1  ;;  %v1080_v18 = vand.u32 2147483647, %v2338_v42  ;;  %v1082_v5 = vand.u32 2147483648, %v2338_v42  ;;  %vm1077_vm2 = vweird.f32 %v1553_v34  ;;  %vm838_vm5 = vmor %vm836_vm0, %vm837_vm1 }
 0x155   :  { %v833_v57 = vsub.f32 1.0, %v832_v52  ;;  %1178 = vst [vmem:[#allocation8 + $0x68] sm:$0xff] %v1146_v29  ;;  %vm841_vm3 = vcmp.eq.f32.partialorder %v840_v55, 8.507059e+37  ;;  %vm1076_vm4 = vweird.f32 %v2338_v42  ;;  %v843_v56 = vor.u32 1.1754944e-38, %v842_v45 }
 0x156   :  { %v1073_v59 = vsub.f32 1.0, %v1072_v53  ;;  %v1555_v61 = vpop.eup %1554  ;;  %1194 = vst [vmem:[#allocation8 + $0xe8] sm:$0xff] %v1162_v58  ;;  %vm1078_vm6 = vmor %vm1076_vm4, %vm1077_vm2  ;;  %vm1081_vm7 = vcmp.eq.f32.partialorder %v1080_v18, 8.507059e+37  ;;  %v1083_v16 = vor.u32 1.1754944e-38, %v1082_v5  ;;  %v415_v21 = vadd.f32 %v414_v25, %v1716_v28 }
 0x157   :  { %v834_v62 = vmul.f32 %v1551_v2, %v833_v57  ;;  %v620_v54 = vadd.f32 1.0, %v1555_v61  ;;  %v455_v17 = vadd.f32 %v454_v7, %v1716_v28  ;;  %v857_v36 = vand.u32 2147483648, %v2356_v48 }
 0x158   :  { %v1074_v41 = vmul.f32 %v1553_v34, %v1073_v59  ;;  %v1557_v38 = vpop.eup %1556  ;;  %v855_v42 = vand.u32 2147483647, %v2356_v48  ;;  %vm851_vm9 = vweird.f32 %v2356_v48 }
 0x159   :  { %v835_v31 = vadd.f32 %v1551_v2, %v834_v62  ;;  %v847_v15 = vmul.f32 %v1557_v38, %v2356_v48  ;;  %1558 = vrcp.f32 %v620_v54  ;;  %vm852_vm8 = vweird.f32 %v1557_v38 }
 0x15a   :  { %v1075_v14 = vadd.f32 %v1553_v34, %v1074_v41  ;;  %vm853_vm10 = vmor %vm851_vm9, %vm852_vm8  ;;  %v858_v39 = vor.u32 1.1754944e-38, %v857_v36  ;;  %vm856_vm11 = vcmp.eq.f32.partialorder %v855_v42, 8.507059e+37  ;;  %v1097_v46 = vand.u32 2147483648, %v620_v54  ;;  %v456_v8 = vpop.f32.mrf.mxu3 }
 0x15b   :  { %v839_v60 = vsel %vm838_vm5, %v1551_v2, %v835_v31  ;;  %v848_v6 = vsub.f32 1.0, %v847_v15  ;;  %v1095_v10 = vand.u32 2147483647, %v620_v54  ;;  %vm1091_vm13 = vweird.f32 %v620_v54 }
 0x15c   :  { %v844_v22 = vsel %vm841_vm3, %v843_v56, %v839_v60  ;;  %v1079_v20 = vsel %vm1078_vm6, %v1553_v34, %v1075_v14  ;;  %v1098_v0 = vor.u32 1.1754944e-38, %v1097_v46  ;;  %v457_v48 = vadd.f32 %v456_v8, %v1716_v28 }
 0x15d   :  { %v1115_v30 = vmul.f32 %v844_v22, %v2238_v23  ;;  %v1084_v4 = vsel %vm1081_vm7, %v1083_v16, %v1079_v20  ;;  %v849_v33 = vmul.f32 %v1557_v38, %v848_v6  ;;  %v416_v23 = vpop.f32.mrf.mxu1  ;;  %vm1096_vm15 = vcmp.eq.f32.partialorder %v1095_v10, 8.507059e+37 }
 0x15e   :  { %v1131_v3 = vmul.f32 %v1084_v4, %v2252_v63  ;;  %v417_v49 = vadd.f32 %v416_v23, %v1716_v28 }
 0x15f   :  { %v1147_v12 = vmul.f32 %v1115_v30, %v415_v21  ;;  %v1559_v27 = vpop.eup %1558  ;;  %v850_v19 = vadd.f32 %v1557_v38, %v849_v33 }
 0x160   :  { %v1163_v50 = vmul.f32 %v1131_v3, %v455_v17  ;;  %v1087_v40 = vmul.f32 %v1559_v27, %v620_v54  ;;  %vm1092_vm12 = vweird.f32 %v1559_v27 }
 0x161   :  { %1179 = vst [vmem:[#allocation8 + $0x70] sm:$0xff] %v1147_v12  ;;  %v854_v37 = vsel %vm853_vm10, %v1557_v38, %v850_v19  ;;  %vm1093_vm14 = vmor %vm1091_vm13, %vm1092_vm12 }
 0x162   :  { %1195 = vst [vmem:[#allocation8 + $0xf0] sm:$0xff] %v1163_v50  ;;  %v859_v43 = vsel %vm856_vm11, %v858_v39, %v854_v37  ;;  %v1088_v63 = vsub.f32 1.0, %v1087_v40 }
 0x163   :  { %v1116_v9 = vmul.f32 %v859_v43, %v2290_v44 }
 0x164   :  { %v1089_v47 = vmul.f32 %v1559_v27, %v1088_v63 }
 0x165   :  { %v1148_v13 = vmul.f32 %v1116_v9, %v417_v49 }
 0x166   :  { %v1090_v51 = vadd.f32 %v1559_v27, %v1089_v47 }
 0x167   :  { %1180 = vst [vmem:[#allocation8 + $0x78] sm:$0xff] %v1148_v13 }
 0x168   :  { %v1094_v11 = vsel %vm1093_vm14, %v1559_v27, %v1090_v51 }
 0x169   :  { %v1099_v26 = vsel %vm1096_vm15, %v1098_v0, %v1094_v11 }
 0x16a   :  { %v1132_v44 = vmul.f32 %v1099_v26, %v2296_v32 }
 0x16c   :  { %v1164_v35 = vmul.f32 %v1132_v44, %v457_v48 }
 0x16e   :  { %1196 = vst [vmem:[#allocation8 + $0xf8] sm:$0xff] %v1164_v35 }
 0x16f   :  { %1209 = dma.vmem_to_hbm [thread:$0]  %s1202_s3, 4096, %s1204_s7, [#allocation5], %s1642_s27, %s1642_s27, %s1643_s28  }
 0x170   :  { %1636 = dma.done.wait [#allocation5], 4096  }
 0x171   :  { %1637 = vsyncadd [#allocation5], 4294963200 }
 0x172   :  { %1214 = vsyncpa [#allocation4], 1 }
 0x173   :  { %1215 = vsyncpa [#allocation7], 1 }
 0x174   :  { %1216 = vsyncpa [#allocation5], 1 }

</bundles_post_ra>
